<compile_context>
chip_gen: v6e
topology: v6e:2x2x1
jax: 0.10.0
libtpu: 0.0.40
codegen_flags: <defaults>
</compile_context>

<pallas_src>
import functools

import jax
import jax.numpy as jnp
from jax.experimental import pallas as pl
from jax.experimental.pallas import tpu as pltpu


def _round_up(x, m):
    return (x + m - 1) // m * m


# ----------------------- kernel 1: conv stack + max-pool ---------------------

def conv_pool_kernel(x_ref,
                     w1_ref, b1_ref,
                     w2_ref, b2_ref,
                     w3_ref, b3_ref,
                     pooled_ref, mx_ref, *, n_valid, has_pad):
    n_idx = pl.program_id(1)
    last = pl.num_programs(1) - 1
    tn = x_ref.shape[2]
    c3 = w3_ref.shape[1]                                               # 1024

    xb = x_ref[0].astype(jnp.bfloat16)                                 # (k, TN)

    # conv1 + bn1 + relu (BN scale already folded into w1); contract channel
    # dim of the untransposed (k, TN) tile -> (TN, 64).
    h = jax.lax.dot_general(xb, w1_ref[...],
                            dimension_numbers=(((0,), (0,)), ((), ())),
                            preferred_element_type=jnp.float32)        # (TN, 64)
    h = jnp.maximum(h + b1_ref[...], 0.0)

    # conv2 + bn2 + relu
    h = jnp.dot(h.astype(jnp.bfloat16), w2_ref[...],
                preferred_element_type=jnp.float32)                    # (TN, 128)
    h = jnp.maximum(h + b2_ref[...], 0.0)

    # conv3: raw scaled matmul only (bias + ReLU hoisted past the max).
    h3 = jnp.dot(h.astype(jnp.bfloat16), w3_ref[...],
                 preferred_element_type=jnp.float32)                   # (TN, 1024)

    def partial_max(hh):
        # (TN, C) -> (8, C): max across vreg rows (pure VALU, no XLU).
        return hh.reshape(tn // 8, 8, c3).max(axis=0)

    def accum(part):
        @pl.when(n_idx == 0)
        def _():
            mx_ref[...] = part

        @pl.when(n_idx > 0)
        def _():
            mx_ref[...] = jnp.maximum(mx_ref[...], part)

    if has_pad:  # static — only the last tile can contain padded points
        @pl.when(n_idx == last)
        def _():
            row = jax.lax.broadcasted_iota(jnp.int32, (tn, 1), 0) + n_idx * tn
            hm = jnp.where(row < n_valid, h3, -jnp.inf)   # raw domain -> -inf
            accum(partial_max(hm))

        @pl.when(n_idx != last)
        def _():
            accum(partial_max(h3))
    else:
        accum(partial_max(h3))

    # Finalize once: collapse 8 sublanes, then apply conv3's bias + ReLU.
    @pl.when(n_idx == last)
    def _():
        g = jnp.max(mx_ref[...], axis=0, keepdims=True)                # (1, 1024)
        pooled_ref[0] = jnp.maximum(g + b3_ref[...], 0.0)


# ----------------------------- kernel 2: FC head -----------------------------

def fc_head_kernel(g_ref,
                   wf1_ref, b4_ref,
                   wf2_ref, b5_ref,
                   wf3_ref, bias_iden_ref,
                   out_ref):
    g = g_ref[...].astype(jnp.bfloat16)                                # (B, 1024)

    # fc1 + bn4 + relu (scale folded into wf1)
    f = jnp.dot(g, wf1_ref[...], preferred_element_type=jnp.float32)   # (B, 512)
    f = jnp.maximum(f + b4_ref[...], 0.0)

    # fc2 + bn5 + relu (scale folded into wf2)
    f = jnp.dot(f.astype(jnp.bfloat16), wf2_ref[...],
                preferred_element_type=jnp.float32)                    # (B, 256)
    f = jnp.maximum(f + b5_ref[...], 0.0)

    # fc3 + bias + identity
    f = jnp.dot(f.astype(jnp.bfloat16), wf3_ref[...],
                preferred_element_type=jnp.float32)                    # (B, k*k)
    out_ref[...] = f + bias_iden_ref[...]


# --------------------------------- helpers -----------------------------------

def fold_bn(conv_bias, gamma, beta, mean, var, eps=1e-5):
    """Fold (conv/linear bias) + eval-mode BatchNorm into (scale, bias)."""
    scale = gamma / jnp.sqrt(var + eps)
    bias = (conv_bias - mean) * scale + beta
    return scale[None, :].astype(jnp.float32), bias[None, :].astype(jnp.float32)


def fold_weight(w_out_in, scale_1c):
    """(out, in) weight -> (in, out) bf16 with BN scale folded per out column."""
    return (w_out_in.T.astype(jnp.float32) * scale_1c).astype(jnp.bfloat16)


def make_params(key, k):
    """Deterministic synthetic parameters with PyTorch-equivalent shapes."""
    ks = jax.random.split(key, 32)
    it = iter(ks)

    def w(shape, scale=0.1):
        return (scale * jax.random.normal(next(it), shape)).astype(jnp.float32)

    def bn(c):
        gamma = 1.0 + 0.1 * jax.random.normal(next(it), (c,))
        beta = 0.1 * jax.random.normal(next(it), (c,))
        mean = 0.1 * jax.random.normal(next(it), (c,))
        var = 1.0 + 0.1 * jnp.abs(jax.random.normal(next(it), (c,)))
        return gamma.astype(jnp.float32), beta.astype(jnp.float32), \
            mean.astype(jnp.float32), var.astype(jnp.float32)

    p = {}
    p["conv1_w"], p["conv1_b"] = w((64, k)), w((64,))
    p["conv2_w"], p["conv2_b"] = w((128, 64)), w((128,))
    p["conv3_w"], p["conv3_b"] = w((1024, 128)), w((1024,))
    p["fc1_w"], p["fc1_b"] = w((512, 1024)), w((512,))
    p["fc2_w"], p["fc2_b"] = w((256, 512)), w((256,))
    p["fc3_w"], p["fc3_b"] = w((k * k, 256)), w((k * k,))
    p["bn1"], p["bn2"], p["bn3"], p["bn4"], p["bn5"] = \
        bn(64), bn(128), bn(1024), bn(512), bn(256)
    return p


# --------------------------------- wrapper ------------------------------------

@functools.partial(jax.jit, static_argnames=("k", "tile_n"))
def stnkd_forward(x_bkn, params, *, k, tile_n=1024):
    """x_bkn: (B, k, N) float32 — same layout PyTorch's forward receives."""
    B, kc, N = x_bkn.shape
    assert kc == k
    assert tile_n % 128 == 0

    # No transpose: points stay on the lane axis; bf16 halves HBM/VMEM traffic.
    x = x_bkn.astype(jnp.bfloat16)
    if N <= tile_n:
        tn = _round_up(N, 8)        # single tile; block == full (padded) dim
        n_pad = tn
    else:
        tn = tile_n                 # multiple of 128 -> lane-dense blocks
        n_pad = _round_up(N, tn)
    if n_pad != N:
        x = jnp.pad(x, ((0, 0), (0, 0), (0, n_pad - N)))
    n_tiles = n_pad // tn
    has_pad = n_pad != N

    # Fold BN scales into the weights (f32 fold, bf16 cast); biases stay f32.
    s1, b1 = fold_bn(params["conv1_b"], *params["bn1"])
    s2, b2 = fold_bn(params["conv2_b"], *params["bn2"])
    s3, b3 = fold_bn(params["conv3_b"], *params["bn3"])
    w1 = fold_weight(params["conv1_w"], s1)                            # (k, 64)
    w2 = fold_weight(params["conv2_w"], s2)                            # (64, 128)
    w3 = fold_weight(params["conv3_w"], s3)                            # (128, 1024)

    conv_consts = (w1, b1, w2, b2, w3, b3)
    conv_const_specs = [pl.BlockSpec(a.shape, lambda b, n: (0, 0))
                        for a in conv_consts]

    flops = 2 * B * n_pad * (k * 64 + 64 * 128 + 128 * 1024)
    bytes_accessed = (int(x.size) * x.dtype.itemsize
                      + sum(int(a.size) * a.dtype.itemsize for a in conv_consts)
                      + B * 1024 * 4)

    pooled = pl.pallas_call(
        functools.partial(conv_pool_kernel, n_valid=N, has_pad=has_pad),
        out_shape=jax.ShapeDtypeStruct((B, 1, 1024), jnp.float32),
        grid=(B, n_tiles),
        in_specs=[pl.BlockSpec((1, k, tn), lambda b, n: (b, 0, n))]
                 + conv_const_specs,
        out_specs=pl.BlockSpec((1, 1, 1024), lambda b, n: (b, 0, 0)),
        scratch_shapes=[pltpu.VMEM((8, 1024), jnp.float32)],
        compiler_params=pltpu.CompilerParams(
            dimension_semantics=("parallel", "arbitrary"),
            vmem_limit_bytes=32 * 1024 * 1024),
        cost_estimate=pl.CostEstimate(flops=flops, transcendentals=0,
                                      bytes_accessed=bytes_accessed),
    )(x, *conv_consts)

    pooled = pooled.reshape(B, 1024)

    # FC head over the whole batch at once (MXU M-dim = B); weights read once.
    s4, b4 = fold_bn(params["fc1_b"], *params["bn4"])
    s5, b5 = fold_bn(params["fc2_b"], *params["bn5"])
    wf1 = fold_weight(params["fc1_w"], s4)                             # (1024, 512)
    wf2 = fold_weight(params["fc2_w"], s5)                             # (512, 256)
    wf3 = params["fc3_w"].T.astype(jnp.bfloat16)                       # (256, k*k)
    bias_iden = (params["fc3_b"][None, :]
                 + jnp.eye(k, dtype=jnp.float32).reshape(1, k * k))

    out = pl.pallas_call(
        fc_head_kernel,
        out_shape=jax.ShapeDtypeStruct((B, k * k), jnp.float32),
    )(pooled, wf1, b4, wf2, b5, wf3, bias_iden)

    return out.reshape(B, k, k)


# ------------------------------- pure-JAX reference ---------------------------

def stnkd_reference(x_bkn, params, *, k):
    """Reference matching the PyTorch forward (eval-mode BN) with the same
    folded-scale bf16 matmul formulation as the kernels (f32 accumulation)."""
    h = jnp.transpose(x_bkn, (0, 2, 1)).astype(jnp.bfloat16)           # (B, N, k)

    def conv_block(h, w, bconv, bn):
        s, bias = fold_bn(bconv, *bn)
        y = jnp.einsum("bnc,cd->bnd", h.astype(jnp.bfloat16), fold_weight(w, s),
                       preferred_element_type=jnp.float32)
        return jnp.maximum(y + bias, 0.0)

    h = conv_block(h, params["conv1_w"], params["conv1_b"], params["bn1"])
    h = conv_block(h, params["conv2_w"], params["conv2_b"], params["bn2"])
    h = conv_block(h, params["conv3_w"], params["conv3_b"], params["bn3"])
    g = jnp.max(h, axis=1)                                             # (B, 1024)

    def fc_block(f, w, bfc, bn):
        s, bias = fold_bn(bfc, *bn)
        y = jnp.dot(f.astype(jnp.bfloat16), fold_weight(w, s),
                    preferred_element_type=jnp.float32)
        return jnp.maximum(y + bias, 0.0)

    f = fc_block(g, params["fc1_w"], params["fc1_b"], params["bn4"])
    f = fc_block(f, params["fc2_w"], params["fc2_b"], params["bn5"])
    f = jnp.dot(f.astype(jnp.bfloat16), params["fc3_w"].T.astype(jnp.bfloat16),
                preferred_element_type=jnp.float32)
    f = f + params["fc3_b"][None, :] + jnp.eye(k, dtype=jnp.float32).reshape(1, k * k)
    return f.reshape(-1, k, k)


if __name__ == "__main__":
    B, K, N = 2, 16, 32  # small shapes: batch=2, k=16 feature dims, 32 points
    key = jax.random.PRNGKey(0)
    kx, kp = jax.random.split(key)
    x = jax.random.normal(kx, (B, K, N), dtype=jnp.float32)  # PyTorch (B, k, N)
    params = make_params(kp, K)

    out = jax.block_until_ready(stnkd_forward(x, params, k=K))
    ref = stnkd_reference(x, params, k=K)
    assert out.shape == (B, K, K)
    assert jnp.allclose(out, ref, atol=2e-3, rtol=2e-3), "mismatch vs reference"

    # Exercise the multi-tile + padded-points path (running max, -inf mask).
    N2 = 300
    x2 = jax.random.normal(jax.random.PRNGKey(1), (B, K, N2), dtype=jnp.float32)
    out2 = jax.block_until_ready(stnkd_forward(x2, params, k=K, tile_n=128))
    ref2 = stnkd_reference(x2, params, k=K)
    assert jnp.allclose(out2, ref2, atol=2e-3, rtol=2e-3), "mismatch (tiled N)"

    print("KERNEL_OK")
</pallas_src>

<mosaic_0001>
module attributes {stable_mosaic.version = 11 : i64} {
  func.func @conv_pool_kernel(%arg0: i32, %arg1: i32, %arg2: memref<1x16x32xbf16, #tpu.memory_space<vmem>>, %arg3: memref<16x64xbf16, #tpu.memory_space<vmem>>, %arg4: memref<1x64xf32, #tpu.memory_space<vmem>>, %arg5: memref<64x128xbf16, #tpu.memory_space<vmem>>, %arg6: memref<1x128xf32, #tpu.memory_space<vmem>>, %arg7: memref<128x1024xbf16, #tpu.memory_space<vmem>>, %arg8: memref<1x1024xf32, #tpu.memory_space<vmem>>, %arg9: memref<1x1x1024xf32, #tpu.memory_space<vmem>>, %arg10: memref<8x1024xf32, #tpu.memory_space<vmem>>) attributes {dimension_semantics = [#tpu.dimension_semantics<parallel>, #tpu.dimension_semantics<arbitrary>], iteration_bounds = array<i64: 2, 1>, scalar_prefetch = 0 : i64, scratch_operands = 1 : i64, tpu.core_type = #tpu.core_type<tc>, window_params = [{transform_indices = @transform_0, window_bounds = array<i64: 1, 16, 32>}, {pipeline_mode = #tpu.pipeline_mode<synchronous>, transform_indices = @transform_1, window_bounds = array<i64: 16, 64>}, {pipeline_mode = #tpu.pipeline_mode<synchronous>, transform_indices = @transform_2, window_bounds = array<i64: 1, 64>}, {pipeline_mode = #tpu.pipeline_mode<synchronous>, transform_indices = @transform_3, window_bounds = array<i64: 64, 128>}, {pipeline_mode = #tpu.pipeline_mode<synchronous>, transform_indices = @transform_4, window_bounds = array<i64: 1, 128>}, {pipeline_mode = #tpu.pipeline_mode<synchronous>, transform_indices = @transform_5, window_bounds = array<i64: 128, 1024>}, {pipeline_mode = #tpu.pipeline_mode<synchronous>, transform_indices = @transform_6, window_bounds = array<i64: 1, 1024>}, {transform_indices = @transform_7, window_bounds = array<i64: 1, 1, 1024>}]} {
    %c0 = arith.constant 0 : index
    %c0_0 = arith.constant 0 : index
    %c0_1 = arith.constant 0 : index
    %0 = vector.load %arg2[%c0, %c0_0, %c0_1] : memref<1x16x32xbf16, #tpu.memory_space<vmem>>, vector<1x16x32xbf16>
    %1 = vector.shape_cast %0 : vector<1x16x32xbf16> to vector<16x32xbf16>
    %c0_2 = arith.constant 0 : index
    %c0_3 = arith.constant 0 : index
    %2 = vector.load %arg3[%c0_2, %c0_3] : memref<16x64xbf16, #tpu.memory_space<vmem>>, vector<16x64xbf16>
    %cst = arith.constant dense<0.000000e+00> : vector<32x64xf32>
    %3 = tpu.matmul %1, %2, %cst {dimension_numbers = #tpu.dot_dimension_numbers<[0], [0], [1], [1], [0, 1, 1, 1], [], []>} : vector<16x32xbf16>, vector<16x64xbf16>, vector<32x64xf32> -> vector<32x64xf32>
    %c0_4 = arith.constant 0 : index
    %c0_5 = arith.constant 0 : index
    %4 = vector.load %arg4[%c0_4, %c0_5] : memref<1x64xf32, #tpu.memory_space<vmem>>, vector<1x64xf32>
    %5 = vector.broadcast %4 : vector<1x64xf32> to vector<32x64xf32>
    %6 = arith.addf %3, %5 : vector<32x64xf32>
    %cst_6 = arith.constant 0.000000e+00 : f32
    %7 = vector.broadcast %cst_6 : f32 to vector<32x64xf32>
    %8 = arith.maximumf %6, %7 : vector<32x64xf32>
    %9 = arith.truncf %8 : vector<32x64xf32> to vector<32x64xbf16>
    %c0_7 = arith.constant 0 : index
    %c0_8 = arith.constant 0 : index
    %10 = vector.load %arg5[%c0_7, %c0_8] : memref<64x128xbf16, #tpu.memory_space<vmem>>, vector<64x128xbf16>
    %cst_9 = arith.constant dense<0.000000e+00> : vector<32x128xf32>
    %11 = tpu.matmul %9, %10, %cst_9 {dimension_numbers = #tpu.dot_dimension_numbers<[1], [0], [0], [1], [0, 0, 1, 1], [], []>} : vector<32x64xbf16>, vector<64x128xbf16>, vector<32x128xf32> -> vector<32x128xf32>
    %c0_10 = arith.constant 0 : index
    %c0_11 = arith.constant 0 : index
    %12 = vector.load %arg6[%c0_10, %c0_11] : memref<1x128xf32, #tpu.memory_space<vmem>>, vector<1x128xf32>
    %13 = vector.broadcast %12 : vector<1x128xf32> to vector<32x128xf32>
    %14 = arith.addf %11, %13 : vector<32x128xf32>
    %cst_12 = arith.constant 0.000000e+00 : f32
    %15 = vector.broadcast %cst_12 : f32 to vector<32x128xf32>
    %16 = arith.maximumf %14, %15 : vector<32x128xf32>
    %17 = arith.truncf %16 : vector<32x128xf32> to vector<32x128xbf16>
    %c0_13 = arith.constant 0 : index
    %c0_14 = arith.constant 0 : index
    %18 = vector.load %arg7[%c0_13, %c0_14] : memref<128x1024xbf16, #tpu.memory_space<vmem>>, vector<128x1024xbf16>
    %cst_15 = arith.constant dense<0.000000e+00> : vector<32x1024xf32>
    %19 = tpu.matmul %17, %18, %cst_15 {dimension_numbers = #tpu.dot_dimension_numbers<[1], [0], [0], [1], [0, 0, 1, 1], [], []>} : vector<32x128xbf16>, vector<128x1024xbf16>, vector<32x1024xf32> -> vector<32x1024xf32>
    %20 = vector.shape_cast %19 : vector<32x1024xf32> to vector<4x8x1024xf32>
    %cst_16 = arith.constant dense<0xFF800000> : vector<8x1024xf32>
    %21 = vector.multi_reduction <maximumf>, %20, %cst_16 [0] : vector<4x8x1024xf32> to vector<8x1024xf32>
    %c0_i32 = arith.constant 0 : i32
    %22 = arith.cmpi eq, %arg1, %c0_i32 : i32
    %23 = arith.extui %22 : i1 to i32
    %c0_i32_17 = arith.constant 0 : i32
    %24 = arith.cmpi ne, %23, %c0_i32_17 : i32
    scf.if %24 {
      %c0_22 = arith.constant 0 : index
      %c0_23 = arith.constant 0 : index
      %31 = vector.load %arg10[%c0_22, %c0_23] : memref<8x1024xf32, #tpu.memory_space<vmem>>, vector<8x1024xf32>
      tpu.vector_store %arg10[%c0_22, %c0_23], %21 {strides = array<i32>} : memref<8x1024xf32, #tpu.memory_space<vmem>>, vector<8x1024xf32>,
    } else {
    }
    %c0_i32_18 = arith.constant 0 : i32
    %25 = arith.cmpi sgt, %arg1, %c0_i32_18 : i32
    %26 = arith.extui %25 : i1 to i32
    %c0_i32_19 = arith.constant 0 : i32
    %27 = arith.cmpi ne, %26, %c0_i32_19 : i32
    scf.if %27 {
      %c0_22 = arith.constant 0 : index
      %c0_23 = arith.constant 0 : index
      %31 = vector.load %arg10[%c0_22, %c0_23] : memref<8x1024xf32, #tpu.memory_space<vmem>>, vector<8x1024xf32>
      %32 = arith.maximumf %31, %21 : vector<8x1024xf32>
      %c0_24 = arith.constant 0 : index
      %c0_25 = arith.constant 0 : index
      %33 = vector.load %arg10[%c0_24, %c0_25] : memref<8x1024xf32, #tpu.memory_space<vmem>>, vector<8x1024xf32>
      tpu.vector_store %arg10[%c0_24, %c0_25], %32 {strides = array<i32>} : memref<8x1024xf32, #tpu.memory_space<vmem>>, vector<8x1024xf32>,
    } else {
    }
    %c0_i32_20 = arith.constant 0 : i32
    %28 = arith.cmpi eq, %arg1, %c0_i32_20 : i32
    %29 = arith.extui %28 : i1 to i32
    %c0_i32_21 = arith.constant 0 : i32
    %30 = arith.cmpi ne, %29, %c0_i32_21 : i32
    scf.if %30 {
      %c0_22 = arith.constant 0 : index
      %c0_23 = arith.constant 0 : index
      %31 = vector.load %arg10[%c0_22, %c0_23] : memref<8x1024xf32, #tpu.memory_space<vmem>>, vector<8x1024xf32>
      %cst_24 = arith.constant dense<0xFF800000> : vector<1024xf32>
      %32 = vector.multi_reduction <maximumf>, %31, %cst_24 [0] : vector<8x1024xf32> to vector<1024xf32>
      %33 = vector.shape_cast %32 : vector<1024xf32> to vector<1x1024xf32>
      %c0_25 = arith.constant 0 : index
      %c0_26 = arith.constant 0 : index
      %34 = vector.load %arg8[%c0_25, %c0_26] : memref<1x1024xf32, #tpu.memory_space<vmem>>, vector<1x1024xf32>
      %35 = arith.addf %33, %34 : vector<1x1024xf32>
      %cst_27 = arith.constant 0.000000e+00 : f32
      %36 = vector.broadcast %cst_27 : f32 to vector<1x1024xf32>
      %37 = arith.maximumf %35, %36 : vector<1x1024xf32>
      %c0_28 = arith.constant 0 : index
      %c0_29 = arith.constant 0 : index
      %c0_30 = arith.constant 0 : index
      %38 = vector.load %arg9[%c0_28, %c0_29, %c0_30] : memref<1x1x1024xf32, #tpu.memory_space<vmem>>, vector<1x1x1024xf32>
      %39 = vector.shape_cast %38 : vector<1x1x1024xf32> to vector<1x1024xf32>
      %40 = vector.shape_cast %37 : vector<1x1024xf32> to vector<1x1x1024xf32>
      tpu.vector_store %arg9[%c0_28, %c0_29, %c0_30], %40 {strides = array<i32>} : memref<1x1x1024xf32, #tpu.memory_space<vmem>>, vector<1x1x1024xf32>,
    } else {
    }
    return
  }
  func.func @transform_0(%arg0: i32, %arg1: i32) -> (i32, i32, i32) {
    %c0_i32 = arith.constant 0 : i32
    %c0_i32_0 = arith.constant 0 : i32
    return %arg0, %c0_i32, %arg1 : i32, i32, i32
  }
  func.func @transform_1(%arg0: i32, %arg1: i32) -> (i32, i32) {
    %c0_i32 = arith.constant 0 : i32
    %c0_i32_0 = arith.constant 0 : i32
    %c0_i32_1 = arith.constant 0 : i32
    return %c0_i32, %c0_i32_0 : i32, i32
  }
  func.func @transform_2(%arg0: i32, %arg1: i32) -> (i32, i32) {
    %c0_i32 = arith.constant 0 : i32
    %c0_i32_0 = arith.constant 0 : i32
    %c0_i32_1 = arith.constant 0 : i32
    return %c0_i32, %c0_i32_0 : i32, i32
  }
  func.func @transform_3(%arg0: i32, %arg1: i32) -> (i32, i32) {
    %c0_i32 = arith.constant 0 : i32
    %c0_i32_0 = arith.constant 0 : i32
    %c0_i32_1 = arith.constant 0 : i32
    return %c0_i32, %c0_i32_0 : i32, i32
  }
  func.func @transform_4(%arg0: i32, %arg1: i32) -> (i32, i32) {
    %c0_i32 = arith.constant 0 : i32
    %c0_i32_0 = arith.constant 0 : i32
    %c0_i32_1 = arith.constant 0 : i32
    return %c0_i32, %c0_i32_0 : i32, i32
  }
  func.func @transform_5(%arg0: i32, %arg1: i32) -> (i32, i32) {
    %c0_i32 = arith.constant 0 : i32
    %c0_i32_0 = arith.constant 0 : i32
    %c0_i32_1 = arith.constant 0 : i32
    return %c0_i32, %c0_i32_0 : i32, i32
  }
  func.func @transform_6(%arg0: i32, %arg1: i32) -> (i32, i32) {
    %c0_i32 = arith.constant 0 : i32
    %c0_i32_0 = arith.constant 0 : i32
    %c0_i32_1 = arith.constant 0 : i32
    return %c0_i32, %c0_i32_0 : i32, i32
  }
  func.func @transform_7(%arg0: i32, %arg1: i32) -> (i32, i32, i32) {
    %c0_i32 = arith.constant 0 : i32
    %c0_i32_0 = arith.constant 0 : i32
    %c0_i32_1 = arith.constant 0 : i32
    return %arg0, %c0_i32, %c0_i32_0 : i32, i32, i32
  }
}

module attributes {stable_mosaic.version = 11 : i64} {
  func.func @fc_head_kernel(%arg0: memref<2x1024xf32, #tpu.memory_space<vmem>>, %arg1: memref<1024x512xbf16, #tpu.memory_space<vmem>>, %arg2: memref<1x512xf32, #tpu.memory_space<vmem>>, %arg3: memref<512x256xbf16, #tpu.memory_space<vmem>>, %arg4: memref<1x256xf32, #tpu.memory_space<vmem>>, %arg5: memref<256x256xbf16, #tpu.memory_space<vmem>>, %arg6: memref<1x256xf32, #tpu.memory_space<vmem>>, %arg7: memref<2x256xf32, #tpu.memory_space<vmem>>) attributes {dimension_semantics = [], scalar_prefetch = 0 : i64, scratch_operands = 0 : i64, tpu.core_type = #tpu.core_type<tc>} {
    %c0 = arith.constant 0 : index
    %c0_0 = arith.constant 0 : index
    %0 = vector.load %arg0[%c0, %c0_0] : memref<2x1024xf32, #tpu.memory_space<vmem>>, vector<2x1024xf32>
    %1 = arith.truncf %0 : vector<2x1024xf32> to vector<2x1024xbf16>
    %c0_1 = arith.constant 0 : index
    %c0_2 = arith.constant 0 : index
    %2 = vector.load %arg1[%c0_1, %c0_2] : memref<1024x512xbf16, #tpu.memory_space<vmem>>, vector<1024x512xbf16>
    %cst = arith.constant dense<0.000000e+00> : vector<2x512xf32>
    %3 = tpu.matmul %1, %2, %cst {dimension_numbers = #tpu.dot_dimension_numbers<[1], [0], [0], [1], [0, 0, 1, 1], [], []>} : vector<2x1024xbf16>, vector<1024x512xbf16>, vector<2x512xf32> -> vector<2x512xf32>
    %c0_3 = arith.constant 0 : index
    %c0_4 = arith.constant 0 : index
    %4 = vector.load %arg2[%c0_3, %c0_4] : memref<1x512xf32, #tpu.memory_space<vmem>>, vector<1x512xf32>
    %5 = vector.broadcast %4 : vector<1x512xf32> to vector<2x512xf32>
    %6 = arith.addf %3, %5 : vector<2x512xf32>
    %cst_5 = arith.constant 0.000000e+00 : f32
    %7 = vector.broadcast %cst_5 : f32 to vector<2x512xf32>
    %8 = arith.maximumf %6, %7 : vector<2x512xf32>
    %9 = arith.truncf %8 : vector<2x512xf32> to vector<2x512xbf16>
    %c0_6 = arith.constant 0 : index
    %c0_7 = arith.constant 0 : index
    %10 = vector.load %arg3[%c0_6, %c0_7] : memref<512x256xbf16, #tpu.memory_space<vmem>>, vector<512x256xbf16>
    %cst_8 = arith.constant dense<0.000000e+00> : vector<2x256xf32>
    %11 = tpu.matmul %9, %10, %cst_8 {dimension_numbers = #tpu.dot_dimension_numbers<[1], [0], [0], [1], [0, 0, 1, 1], [], []>} : vector<2x512xbf16>, vector<512x256xbf16>, vector<2x256xf32> -> vector<2x256xf32>
    %c0_9 = arith.constant 0 : index
    %c0_10 = arith.constant 0 : index
    %12 = vector.load %arg4[%c0_9, %c0_10] : memref<1x256xf32, #tpu.memory_space<vmem>>, vector<1x256xf32>
    %13 = vector.broadcast %12 : vector<1x256xf32> to vector<2x256xf32>
    %14 = arith.addf %11, %13 : vector<2x256xf32>
    %cst_11 = arith.constant 0.000000e+00 : f32
    %15 = vector.broadcast %cst_11 : f32 to vector<2x256xf32>
    %16 = arith.maximumf %14, %15 : vector<2x256xf32>
    %17 = arith.truncf %16 : vector<2x256xf32> to vector<2x256xbf16>
    %c0_12 = arith.constant 0 : index
    %c0_13 = arith.constant 0 : index
    %18 = vector.load %arg5[%c0_12, %c0_13] : memref<256x256xbf16, #tpu.memory_space<vmem>>, vector<256x256xbf16>
    %cst_14 = arith.constant dense<0.000000e+00> : vector<2x256xf32>
    %19 = tpu.matmul %17, %18, %cst_14 {dimension_numbers = #tpu.dot_dimension_numbers<[1], [0], [0], [1], [0, 0, 1, 1], [], []>} : vector<2x256xbf16>, vector<256x256xbf16>, vector<2x256xf32> -> vector<2x256xf32>
    %c0_15 = arith.constant 0 : index
    %c0_16 = arith.constant 0 : index
    %20 = vector.load %arg6[%c0_15, %c0_16] : memref<1x256xf32, #tpu.memory_space<vmem>>, vector<1x256xf32>
    %21 = vector.broadcast %20 : vector<1x256xf32> to vector<2x256xf32>
    %22 = arith.addf %19, %21 : vector<2x256xf32>
    %c0_17 = arith.constant 0 : index
    %c0_18 = arith.constant 0 : index
    %23 = vector.load %arg7[%c0_17, %c0_18] : memref<2x256xf32, #tpu.memory_space<vmem>>, vector<2x256xf32>
    tpu.vector_store %arg7[%c0_17, %c0_18], %22 {strides = array<i32>} : memref<2x256xf32, #tpu.memory_space<vmem>>, vector<2x256xf32>,
    return
  }
}

</mosaic_0001>

<bundles_post_ra>
// kernel: stnkd_forward.2
= control target key start
LH: loop header
LB: loop body
LE: loop exit
PB: predicated region body
PF: predicated region fallthrough
CT: control target
= control target key end

     0   :  { %s1618_s24 = smov 0   ;;  %s1620_s25 = smov 0   ;;  %s1915_s0 = inlined_call_operand.vmem [shape: bf16[2,16,32], index: 0, kind: input, shape index: {}]   ;;  %s1916_s1 = inlined_call_operand.vmem [shape: bf16[16,64], index: 1, kind: input, shape index: {}]   ;;  %s1917_s2 = inlined_call_operand.vmem [shape: f32[1,64], index: 2, kind: input, shape index: {}]   ;;  %s1918_s3 = inlined_call_operand.vmem [shape: bf16[64,128], index: 3, kind: input, shape index: {}]   ;;  %s1919_s4 = inlined_call_operand.vmem [shape: f32[1,128], index: 4, kind: input, shape index: {}]   ;;  %s1920_s5 = inlined_call_operand.vmem [shape: bf16[128,1024], index: 5, kind: input, shape index: {}]   ;;  %s1921_s6 = inlined_call_operand.vmem [shape: f32[1,1024], index: 6, kind: input, shape index: {}]   ;;  %s1922_s7 = inlined_call_operand.vmem [shape: f32[2,1,1024], index: 7, kind: output, shape index: {}]  }
   0x1   :  { %s1622_s26 = smov 0  }
   0x2 LB: > { %s29_s27 = sadd.s32 1, %s1570_s25  ;;  %p1410_p0 = scmp.ge.s32.totalorder %s1574_s26, 1  ;;  %s1574_s26 = sphi %s1622_s26, %s17_s26   ;;  %s1570_s25 = sphi %s1620_s25, %s1924_s25   ;;  %s1566_s24 = sphi %s1618_s24, %s1923_s24  }
   0x3   : > { %p31_p1 = scmp.ge.s32.totalorder %s29_s27, 2  ;;  %p254_p2 = scmp.lt.s32.totalorder %s1574_s26, 3 }
   0x5   : > { %s1926_s27 = smov (%p31_p1, %s29_s27), 0  ;;  %p255_p3 = pnand %p1410_p0, %p254_p2 }
   0x6   : > { %p288_p4 = scmp.lt.s32.totalorder (!%p255_p3), %s1566_s24, 1 }
   0x7   : > { %258 = sbr.rel (%p255_p3) target bundleno = 798 (0x31e), region = 48 }
   0xc   : > { %v1547_v0 = vld [vmem:[%s1916_s1] sm:$0xff]   ;;  %v1548_v1 = vld [vmem:[%s1918_s3 + $0x18] sm:$0xff]   ;;  %s1928_s24 = smov (!%p288_p4, %s1566_s24), 1  ;;  %vm340_vm0 = vcmask 130048   ;;  %v1549_v5 = vld [vmem:[%s1918_s3 + $0x10] sm:$0xff]   ;;  %vm441_vm1 = vcmask 523264  }
   0xd   : > { %1502 = vmatprep.subr.bf16.mxu0 %v1547_v0  ;;  %1508 = vmatprep.subr.bf16.mxu1 %v1548_v1  ;;  %s1492_s9 = sshll.u32 %s1928_s24, 3  ;;  %v1550_v6 = vld [vmem:[%s1918_s3 + $0x8] sm:$0xff]   ;;  %v1551_v7 = vld [vmem:[%s1918_s3] sm:$0xff]  }
   0xe   : > { %1503 = vmatpush3.bf16.msra.mxu0 %v1547_v0  ;;  %1509 = vmatpush3.bf16.msra.mxu1 %v1548_v1  ;;  %s295_s12 = scalar_lea.vmem %s1915_s0, %s1492_s9  ;;  %v559_v8 = vld [vmem:[%s1920_s5 + $0x1c0] sm:$0xff]  ;;  %v560_v10 = vld [vmem:[%s1920_s5 + $0x1c8] sm:$0xff]  ;;  %s299_s11 = scalar_lea.vmem %s1922_s7, %s1492_s9 }
   0xf   : > { %v1546_v2 = vld [vmem:[%s295_s12] sm:$0xff]   ;;  %1510 = vmatprep.subr.bf16.mxu1 %v1549_v5  ;;  %v564_v13 = vld [vmem:[%s1920_s5 + $0x1e8] sm:$0xff] }
  0x10   : > { %318 = vxpose.xlu0.c.b16.start.end [1/1] (short) (narrow) %v1546_v2, 32  ;;  %v563_v9 = vld [vmem:[%s1920_s5 + $0x1e0] sm:$0xff]  ;;  %v1484_v16 = vcombine.low %v560_v10, %v564_v13  ;;  %v1485_v17 = vcombine.high %v560_v10, %v564_v13  ;;  %v552_v44 = vld [vmem:[%s1920_s5 + $0x188] sm:$0xff] }
  0x11   : > { %v1482_v11 = vcombine.low %v559_v8, %v563_v9  ;;  %v1483_v12 = vcombine.high %v559_v8, %v563_v9  ;;  %v551_v14 = vld [vmem:[%s1920_s5 + $0x180] sm:$0xff]  ;;  %v556_v45 = vld [vmem:[%s1920_s5 + $0x1a8] sm:$0xff] }
  0x12   : > { %1511 = vmatpush3.bf16.msra.mxu1 %v1549_v5  ;;  %v555_v15 = vld [vmem:[%s1920_s5 + $0x1a0] sm:$0xff]  ;;  %v1477_v49 = vcombine.high %v552_v44, %v556_v45  ;;  %v544_v50 = vld [vmem:[%s1920_s5 + $0x148] sm:$0xff]  ;;  %v1476_v52 = vcombine.low %v552_v44, %v556_v45 }
  0x13   : > { %1512 = vmatprep.subr.bf16.mxu1 %v1550_v6  ;;  %v1475_v18 = vcombine.high %v551_v14, %v555_v15  ;;  %887 = vmatprep.subr.bf16.mxu0 %v1483_v12  ;;  %v1474_v19 = vcombine.low %v551_v14, %v555_v15  ;;  %v543_v20 = vld [vmem:[%s1920_s5 + $0x140] sm:$0xff]  ;;  %v548_v51 = vld [vmem:[%s1920_s5 + $0x168] sm:$0xff] }
  0x14   : > { %v547_v21 = vld [vmem:[%s1920_s5 + $0x160] sm:$0xff]  ;;  %v1469_v53 = vcombine.high %v544_v50, %v548_v51  ;;  %v536_v54 = vld [vmem:[%s1920_s5 + $0x108] sm:$0xff]  ;;  %v1468_v56 = vcombine.low %v544_v50, %v548_v51  ;;  %v549_v50 = vld [vmem:[%s1920_s5 + $0x170] sm:$0xff] }
  0x15   : > { %v1467_v22 = vcombine.high %v543_v20, %v547_v21  ;;  %v1466_v23 = vcombine.low %v543_v20, %v547_v21  ;;  %v535_v24 = vld [vmem:[%s1920_s5 + $0x100] sm:$0xff]  ;;  %v540_v55 = vld [vmem:[%s1920_s5 + $0x128] sm:$0xff]  ;;  %v546_v51 = vld [vmem:[%s1920_s5 + $0x158] sm:$0xff] }
  0x16   : > { %1513 = vmatpush3.bf16.msra.mxu1 %v1550_v6  ;;  %v539_v25 = vld [vmem:[%s1920_s5 + $0x120] sm:$0xff]  ;;  %v1461_v57 = vcombine.high %v536_v54, %v540_v55  ;;  %v528_v58 = vld [vmem:[%s1920_s5 + $0xc8] sm:$0xff]  ;;  %v1460_v60 = vcombine.low %v536_v54, %v540_v55 }
  0x17   : > { %1514 = vmatprep.subr.bf16.mxu1 %v1551_v7  ;;  %v1459_v26 = vcombine.high %v535_v24, %v539_v25  ;;  %v1458_v27 = vcombine.low %v535_v24, %v539_v25  ;;  %v527_v28 = vld [vmem:[%s1920_s5 + $0xc0] sm:$0xff]  ;;  %v532_v59 = vld [vmem:[%s1920_s5 + $0xe8] sm:$0xff]  ;;  %v565_v24 = vld [vmem:[%s1920_s5 + $0x1f0] sm:$0xff] }
  0x18   : > { %v531_v29 = vld [vmem:[%s1920_s5 + $0xe0] sm:$0xff]  ;;  %v1453_v61 = vcombine.high %v528_v58, %v532_v59  ;;  %v1452_v62 = vcombine.low %v528_v58, %v532_v59  ;;  %v520_v1 = vld [vmem:[%s1920_s5 + $0x88] sm:$0xff]  ;;  %v562_v25 = vld [vmem:[%s1920_s5 + $0x1d8] sm:$0xff] }
  0x19   : > { %v1451_v30 = vcombine.high %v527_v28, %v531_v29  ;;  %v1450_v31 = vcombine.low %v527_v28, %v531_v29  ;;  %v1414_v34 = vld [vmem:[%s1917_s2] ss:$0 sm:$0xff]  ;;  %v512_v9 = vld [vmem:[%s1920_s5 + $0x48] sm:$0xff]  ;;  %v537_v59 = vld [vmem:[%s1920_s5 + $0x110] sm:$0xff] }
  0x1a   : > { %1515 = vmatpush3.bf16.msra.mxu1 %v1551_v7  ;;  %v519_v63 = vld [vmem:[%s1920_s5 + $0x80] sm:$0xff] }
  0x1b   : > { %940 = vmatprep.subr.bf16.mxu1 %v1485_v17  ;;  %v523_v0 = vld [vmem:[%s1920_s5 + $0xa0] sm:$0xff]  ;;  %v504_v17 = vld [vmem:[%s1920_s5 + $0x8] sm:$0xff] }
  0x1c   : > { %v1443_v2 = vcombine.high %v519_v63, %v523_v0  ;;  %v511_v7 = vld [vmem:[%s1920_s5 + $0x40] sm:$0xff] }
  0x1d   : > { %v515_v8 = vld [vmem:[%s1920_s5 + $0x60] sm:$0xff] }
  0x1e   : > { %v1435_v10 = vcombine.high %v511_v7, %v515_v8  ;;  %v1434_v12 = vcombine.low %v511_v7, %v515_v8  ;;  %v503_v15 = vld [vmem:[%s1920_s5] sm:$0xff]  ;;  %v530_v7 = vld [vmem:[%s1920_s5 + $0xd8] sm:$0xff] }
  0x1f   : > { %v534_v8 = vld [vmem:[%s1920_s5 + $0xf8] sm:$0xff] }
  0x72   : > { %v326_v3 = vpop.trf.xlu0 }
  0x73   : > { %1504 = vmatprep.mubr.msk.bf16.mxu0 %vm340_vm0, %v326_v3  ;;  %v524_v3 = vld [vmem:[%s1920_s5 + $0xa8] sm:$0xff] }
  0x74   : > { %v1444_v5 = vcombine.low %v520_v1, %v524_v3  ;;  %v1445_v6 = vcombine.high %v520_v1, %v524_v3 }
  0x76   : > { %v327_v4 = vpop.trf.xlu0 }
  0x77   : > { %1505 = vmatmul.mubr.msk.bf16.vlgmr.msra.gmra.mxu0 %vm340_vm0, %v327_v4  ;;  %v1442_v4 = vcombine.low %v519_v63, %v523_v0 }
  0x78   : > { %888 = vmatpush1.bf16.msra.mxu0 %v1482_v11  ;;  %v516_v11 = vld [vmem:[%s1920_s5 + $0x68] sm:$0xff] }
  0x79   : > { %889 = vmatprep.subr.bf16.mxu0 %v1475_v18  ;;  %v1436_v13 = vcombine.low %v512_v9, %v516_v11  ;;  %v1437_v14 = vcombine.high %v512_v9, %v516_v11 }
  0x7c   : > { %890 = vmatpush1.bf16.msra.mxu0 %v1474_v19  ;;  %v508_v19 = vld [vmem:[%s1920_s5 + $0x28] sm:$0xff] }
  0x7d   : > { %891 = vmatprep.subr.bf16.mxu0 %v1467_v22  ;;  %v1428_v21 = vcombine.low %v504_v17, %v508_v19  ;;  %v1429_v22 = vcombine.high %v504_v17, %v508_v19 }
  0x80   : > { %892 = vmatpush1.bf16.msra.mxu0 %v1466_v23  ;;  %v561_v23 = vld [vmem:[%s1920_s5 + $0x1d0] sm:$0xff] }
  0x81   : > { %893 = vmatprep.subr.bf16.mxu0 %v1459_v26  ;;  %v1487_v26 = vcombine.high %v561_v23, %v565_v24  ;;  %v1486_v28 = vcombine.low %v561_v23, %v565_v24  ;;  %v514_v23 = vld [vmem:[%s1920_s5 + $0x58] sm:$0xff] }
  0x82   : > { %v518_v24 = vld [vmem:[%s1920_s5 + $0x78] sm:$0xff] }
  0x84   : > { %894 = vmatpush1.bf16.msra.mxu0 %v1458_v27  ;;  %v566_v27 = vld [vmem:[%s1920_s5 + $0x1f8] sm:$0xff] }
  0x85   : > { %895 = vmatprep.subr.bf16.mxu0 %v1451_v30  ;;  %v1488_v29 = vcombine.low %v562_v25, %v566_v27  ;;  %v1489_v30 = vcombine.high %v562_v25, %v566_v27 }
  0x88   : > { %896 = vmatpush1.bf16.msra.mxu0 %v1450_v31  ;;  %v1576_v31 = vmov 0  }
  0x89   : > { %897 = vmatprep.subr.bf16.mxu0 %v1443_v2  ;;  %919 = vmatprep.mubr.bf16.mxu0 %v1576_v31 }
  0x8c   : > { %898 = vmatpush1.bf16.msra.mxu0 %v1442_v4 }
  0x8d   : > { %899 = vmatprep.subr.bf16.mxu0 %v1435_v10 }
  0x90   : > { %900 = vmatpush1.bf16.msra.mxu0 %v1434_v12  ;;  %v1457_v12 = vcombine.high %v530_v7, %v534_v8 }
 0x137   : > { %v1506_v32 = vpop.f32.mrf.mxu0 }
 0x138   : > { %v390_v38 = vadd.f32 %v1506_v32, %v1414_v34 }
 0x139   : > { %v381_v33 = vpop.f32.mrf.mxu0 }
 0x13a   : > { %v382_v36 = vadd.f32 %v1414_v34, %v381_v33  ;;  %v398_v46 = vmax.f32 %v390_v38, 0.0 }
 0x13b   : > { %v1507_v35 = vpop.f32.mrf.mxu0 }
 0x13c   : > { %v393_v37 = vadd.f32 %v1507_v35, %v1414_v34  ;;  %v396_v42 = vmax.f32 %v382_v36, 0.0 }
 0x13d   : > { %v384_v39 = vpop.f32.mrf.mxu0 }
 0x13e   : > { %v385_v40 = vadd.f32 %v1414_v34, %v384_v39  ;;  %v399_v41 = vmax.f32 %v393_v37, 0.0  ;;  %v1419_v34 = vld [vmem:[%s1919_s4] ss:$0 sm:$0xff]  ;;  %v553_v39 = vld [vmem:[%s1920_s5 + $0x190] sm:$0xff] }
 0x140   : > { %v397_v43 = vmax.f32 %v385_v40, 0.0  ;;  %v401_v48 = vpack.c.bf16 %v399_v41, %v398_v46  ;;  %v557_v40 = vld [vmem:[%s1920_s5 + $0x1b0] sm:$0xff]  ;;  %v554_v41 = vld [vmem:[%s1920_s5 + $0x198] sm:$0xff] }
 0x141   : > { %v1478_v54 = vcombine.low %v553_v39, %v557_v40 }
 0x142   : > { %v400_v47 = vpack.c.bf16 %v397_v43, %v396_v42  ;;  %v558_v42 = vld [vmem:[%s1920_s5 + $0x1b8] sm:$0xff] }
 0x143   : > { %v1480_v55 = vcombine.low %v554_v41, %v558_v42 }
 0x144   : > { %1516 = vmatprep.mubr.msk.bf16.mxu1 %vm441_vm1, %v400_v47  ;;  %v1479_v47 = vcombine.high %v553_v39, %v557_v40 }
 0x145   : > { %1517 = vmatmul.mubr.msk.bf16.vlgmr.msra.gmra.mxu1 %vm441_vm1, %v401_v48  ;;  %v1481_v48 = vcombine.high %v554_v41, %v558_v42 }
 0x146   : > { %941 = vmatpush1.bf16.msra.mxu1 %v1484_v16  ;;  %v507_v16 = vld [vmem:[%s1920_s5 + $0x20] sm:$0xff]  ;;  %972 = vmatprep.mubr.bf16.mxu1 %v1576_v31 }
 0x147   : > { %942 = vmatprep.subr.bf16.mxu1 %v1477_v49  ;;  %v1427_v18 = vcombine.high %v503_v15, %v507_v16  ;;  %v1426_v20 = vcombine.low %v503_v15, %v507_v16  ;;  %v545_v49 = vld [vmem:[%s1920_s5 + $0x150] sm:$0xff]  ;;  %v522_v15 = vld [vmem:[%s1920_s5 + $0x98] sm:$0xff] }
 0x148   : > { %v1470_v0 = vcombine.low %v545_v49, %v549_v50  ;;  %v526_v16 = vld [vmem:[%s1920_s5 + $0xb8] sm:$0xff] }
 0x149   : > { %901 = vmatprep.subr.bf16.mxu0 %v1427_v18  ;;  %v1456_v18 = vcombine.low %v530_v7, %v534_v8 }
 0x14a   : > { %943 = vmatpush1.bf16.msra.mxu1 %v1476_v52  ;;  %902 = vmatpush1.bf16.msra.mxu0 %v1426_v20  ;;  %v550_v52 = vld [vmem:[%s1920_s5 + $0x178] sm:$0xff]  ;;  %v1449_v20 = vcombine.high %v522_v15, %v526_v16 }
 0x14b   : > { %944 = vmatprep.subr.bf16.mxu1 %v1469_v53  ;;  %993 = vmatprep.subr.bf16.mxu0 %v1487_v26  ;;  %v1473_v58 = vcombine.high %v546_v51, %v550_v52  ;;  %v1472_v1 = vcombine.low %v546_v51, %v550_v52  ;;  %v1448_v26 = vcombine.low %v522_v15, %v526_v16 }
 0x14e   : > { %945 = vmatpush1.bf16.msra.mxu1 %v1468_v56 }
 0x14f   : > { %946 = vmatprep.subr.bf16.mxu1 %v1461_v57  ;;  %v1471_v57 = vcombine.high %v545_v49, %v549_v50 }
 0x152   : > { %947 = vmatpush1.bf16.msra.mxu1 %v1460_v60  ;;  %v541_v60 = vld [vmem:[%s1920_s5 + $0x130] sm:$0xff] }
 0x153   : > { %948 = vmatprep.subr.bf16.mxu1 %v1453_v61  ;;  %v538_v61 = vld [vmem:[%s1920_s5 + $0x118] sm:$0xff]  ;;  %v1463_v3 = vcombine.high %v537_v59, %v541_v60  ;;  %v1462_v9 = vcombine.low %v537_v59, %v541_v60 }
 0x156   : > { %949 = vmatpush1.bf16.msra.mxu1 %v1452_v62  ;;  %v542_v62 = vld [vmem:[%s1920_s5 + $0x138] sm:$0xff] }
 0x157   : > { %950 = vmatprep.subr.bf16.mxu1 %v1445_v6  ;;  %v1465_v4 = vcombine.high %v538_v61, %v542_v62  ;;  %v533_v6 = vld [vmem:[%s1920_s5 + $0xf0] sm:$0xff]  ;;  %v1464_v10 = vcombine.low %v538_v61, %v542_v62 }
 0x15a   : > { %951 = vmatpush1.bf16.msra.mxu1 %v1444_v5  ;;  %v529_v5 = vld [vmem:[%s1920_s5 + $0xd0] sm:$0xff] }
 0x15b   : > { %952 = vmatprep.subr.bf16.mxu1 %v1437_v14  ;;  %v1455_v11 = vcombine.high %v529_v5, %v533_v6  ;;  %v525_v14 = vld [vmem:[%s1920_s5 + $0xb0] sm:$0xff]  ;;  %v1454_v17 = vcombine.low %v529_v5, %v533_v6 }
 0x15e   : > { %953 = vmatpush1.bf16.msra.mxu1 %v1436_v13  ;;  %v521_v13 = vld [vmem:[%s1920_s5 + $0x90] sm:$0xff] }
 0x15f   : > { %954 = vmatprep.subr.bf16.mxu1 %v1429_v22  ;;  %v1447_v19 = vcombine.high %v521_v13, %v525_v14  ;;  %v517_v22 = vld [vmem:[%s1920_s5 + $0x70] sm:$0xff]  ;;  %v1446_v25 = vcombine.low %v521_v13, %v525_v14 }
 0x162   : > { %955 = vmatpush1.bf16.msra.mxu1 %v1428_v21  ;;  %v513_v21 = vld [vmem:[%s1920_s5 + $0x50] sm:$0xff] }
 0x163   : > { %1046 = vmatprep.subr.bf16.mxu1 %v1489_v30  ;;  %v1439_v27 = vcombine.high %v513_v21, %v517_v22  ;;  %v509_v30 = vld [vmem:[%s1920_s5 + $0x30] sm:$0xff] }
 0x205   : > { %v1518_v32 = vpop.f32.mrf.mxu1 }
 0x206   : > { %v491_v53 = vadd.f32 %v1518_v32, %v1419_v34  ;;  %v506_v32 = vld [vmem:[%s1920_s5 + $0x18] sm:$0xff] }
 0x207   : > { %v482_v33 = vpop.f32.mrf.mxu1 }
 0x208   : > { %v483_v36 = vadd.f32 %v1419_v34, %v482_v33  ;;  %v499_v63 = vmax.f32 %v491_v53, 0.0  ;;  %v510_v33 = vld [vmem:[%s1920_s5 + $0x38] sm:$0xff] }
 0x209   : > { %v1519_v35 = vpop.f32.mrf.mxu1  ;;  %v1432_v39 = vcombine.low %v506_v32, %v510_v33 }
 0x20a   : > { %v497_v43 = vmax.f32 %v483_v36, 0.0  ;;  %v494_v45 = vadd.f32 %v1519_v35, %v1419_v34  ;;  %v1440_v35 = vcombine.low %v514_v23, %v518_v24 }
 0x20b   : > { %v485_v37 = vpop.f32.mrf.mxu1 }
 0x20c   : > { %v486_v38 = vadd.f32 %v1419_v34, %v485_v37  ;;  %v500_v56 = vmax.f32 %v494_v45, 0.0  ;;  %v1438_v34 = vcombine.low %v513_v21, %v517_v22  ;;  %v1433_v37 = vcombine.high %v506_v32, %v510_v33  ;;  %v1883_v33 = vld [vmem:[%s1921_s6] sm:$0xff] }
 0x20e   : > { %v498_v44 = vmax.f32 %v486_v38, 0.0  ;;  %v1817_v2 = vpack.c.bf16 %v500_v56, %v499_v63 }
 0x210   : > { %v1787_v46 = vpack.c.bf16 %v498_v44, %v497_v43 }
 0x212   : > { %920 = vmatmul.mubr.bf16.vlgmr.msra.gmra.mxu0 %v1787_v46  ;;  %973 = vmatmul.mubr.bf16.vlgmr.msra.gmra.mxu1 %v1787_v46 }
 0x213   : > { %994 = vmatpush1.bf16.msra.mxu0 %v1486_v28  ;;  %1047 = vmatpush1.bf16.msra.mxu1 %v1488_v29  ;;  %v1441_v28 = vcombine.high %v514_v23, %v518_v24  ;;  %v505_v29 = vld [vmem:[%s1920_s5 + $0x10] sm:$0xff] }
 0x214   : > { %995 = vmatprep.subr.bf16.mxu0 %v1479_v47  ;;  %1048 = vmatprep.subr.bf16.mxu1 %v1481_v48  ;;  %v1431_v36 = vcombine.high %v505_v29, %v509_v30  ;;  %v1430_v38 = vcombine.low %v505_v29, %v509_v30 }
 0x215   : > { %929 = vmatprep.mubr.bf16.mxu0 %v1576_v31  ;;  %982 = vmatprep.mubr.bf16.mxu1 %v1576_v31 }
 0x217   : > { %996 = vmatpush1.bf16.msra.mxu0 %v1478_v54  ;;  %1049 = vmatpush1.bf16.msra.mxu1 %v1480_v55 }
 0x218   : > { %997 = vmatprep.subr.bf16.mxu0 %v1471_v57  ;;  %1050 = vmatprep.subr.bf16.mxu1 %v1473_v58 }
 0x21a   : > { %930 = vmatmul.mubr.bf16.gmra.mxu0 %v1817_v2  ;;  %983 = vmatmul.mubr.bf16.gmra.mxu1 %v1817_v2 }
 0x21b   : > { %998 = vmatpush1.bf16.msra.mxu0 %v1470_v0  ;;  %1051 = vmatpush1.bf16.msra.mxu1 %v1472_v1 }
 0x21c   : > { %999 = vmatprep.subr.bf16.mxu0 %v1463_v3  ;;  %1052 = vmatprep.subr.bf16.mxu1 %v1465_v4 }
 0x21d   : > { %1025 = vmatprep.mubr.bf16.mxu0 %v1576_v31  ;;  %1078 = vmatprep.mubr.bf16.mxu1 %v1576_v31 }
 0x21f   : > { %1000 = vmatpush1.bf16.msra.mxu0 %v1462_v9  ;;  %1053 = vmatpush1.bf16.msra.mxu1 %v1464_v10  ;;  %v1224_v10 = vlaneseq }
 0x220   : > { %1001 = vmatprep.subr.bf16.mxu0 %v1455_v11  ;;  %1054 = vmatprep.subr.bf16.mxu1 %v1457_v12 }
 0x223   : > { %1002 = vmatpush1.bf16.msra.mxu0 %v1454_v17  ;;  %1055 = vmatpush1.bf16.msra.mxu1 %v1456_v18 }
 0x224   : > { %1003 = vmatprep.subr.bf16.mxu0 %v1447_v19  ;;  %1056 = vmatprep.subr.bf16.mxu1 %v1449_v20  ;;  %v1877_v19 = vshrl.u32 %v1224_v10, 7 }
 0x227   : > { %1004 = vmatpush1.bf16.msra.mxu0 %v1446_v25  ;;  %1057 = vmatpush1.bf16.msra.mxu1 %v1448_v26 }
 0x228   : > { %1005 = vmatprep.subr.bf16.mxu0 %v1439_v27  ;;  %1058 = vmatprep.subr.bf16.mxu1 %v1441_v28  ;;  %v1226_v28 = vsub.s32 0, %v1877_v19 }
 0x22b   : > { %1006 = vmatpush1.bf16.msra.mxu0 %v1438_v34  ;;  %1059 = vmatpush1.bf16.msra.mxu1 %v1440_v35  ;;  %v1234_v34 = vsub.s32 2, %v1877_v19 }
 0x22c   : > { %1007 = vmatprep.subr.bf16.mxu0 %v1431_v36  ;;  %1060 = vmatprep.subr.bf16.mxu1 %v1433_v37 }
 0x22f   : > { %1008 = vmatpush1.bf16.msra.mxu0 %v1430_v38  ;;  %1061 = vmatpush1.bf16.msra.mxu1 %v1432_v39  ;;  %v1230_v38 = vsub.s32 1, %v1877_v19 }
 0x232   : > { %1026 = vmatmul.mubr.bf16.vlgmr.msra.gmra.mxu0 %v1787_v46  ;;  %1079 = vmatmul.mubr.bf16.vlgmr.msra.gmra.mxu1 %v1787_v46 }
 0x233   : > { %1035 = vmatprep.mubr.bf16.mxu0 %v1576_v31  ;;  %1088 = vmatprep.mubr.bf16.mxu1 %v1576_v31 }
 0x23a   : > { %1036 = vmatmul.mubr.bf16.gmra.mxu0 %v1817_v2  ;;  %1089 = vmatmul.mubr.bf16.gmra.mxu1 %v1817_v2 }
 0x2d2   : > { %v921_v40 = vpop.f32.mrf.mxu0  ;;  %v974_v41 = vpop.f32.mrf.mxu1 }
 0x2d4   : > { %v923_v42 = vpop.f32.mrf.mxu0  ;;  %v976_v43 = vpop.f32.mrf.mxu1 }
 0x2d6   : > { %v925_v44 = vpop.f32.mrf.mxu0  ;;  %v978_v45 = vpop.f32.mrf.mxu1 }
 0x2d7   : > { %v1099_v57 = vmax.f32 %v921_v40, %v925_v44  ;;  %v1105_v58 = vmax.f32 %v974_v41, %v978_v45  ;;  %v1238_v40 = vsub.s32 3, %v1877_v19 }
 0x2d8   : > { %v927_v47 = vpop.f32.mrf.mxu0  ;;  %v980_v48 = vpop.f32.mrf.mxu1 }
 0x2d9   : > { %v1102_v54 = vmax.f32 %v923_v42, %v927_v47  ;;  %v1108_v31 = vmax.f32 %v976_v43, %v980_v48 }
 0x2da   : > { %v931_v49 = vpop.f32.mrf.mxu0  ;;  %v984_v50 = vpop.f32.mrf.mxu1 }
 0x2db   : > { %v1100_v61 = vmax.f32 %v1099_v57, %v931_v49  ;;  %v1106_v62 = vmax.f32 %v1105_v58, %v984_v50  ;;  %v1227_v49 = vrot.slane %v1883_v33, %v1226_v28  ;;  %v1231_v58 = vrot.slane %v1883_v33, %v1230_v38 }
 0x2dc   : > { %v933_v51 = vpop.f32.mrf.mxu0  ;;  %v986_v46 = vpop.f32.mrf.mxu1 }
 0x2dd   : > { %v1103_v59 = vmax.f32 %v1102_v54, %v933_v51  ;;  %v1109_v60 = vmax.f32 %v1108_v31, %v986_v46  ;;  %v1577_v51 = vmov 1966171168  }
 0x2de   : > { %v935_v52 = vpop.f32.mrf.mxu0  ;;  %v988_v53 = vpop.f32.mrf.mxu1  ;;  %v1293_v46 = vunpack.c.l.s4 %v1577_v51 }
 0x2df   : > { %v1101_v1 = vmax.f32 %v1100_v61, %v935_v52  ;;  %v1107_v2 = vmax.f32 %v1106_v62, %v988_v53 }
 0x2e0   : > { %v937_v55 = vpop.f32.mrf.mxu0  ;;  %v990_v56 = vpop.f32.mrf.mxu1 }
 0x2e1   : > { %v1104_v63 = vmax.f32 %v1103_v59, %v937_v55  ;;  %v1110_v0 = vmax.f32 %v1109_v60, %v990_v56  ;;  %v1174_v5 = vrot.slane %v1101_v1, 4  ;;  %v1186_v6 = vrot.slane %v1107_v2, 4 }
 0x2e2   : > { %v1239_v60 = vrot.slane %v1883_v33, %v1238_v40 }
 0x2e3   : > { %v1180_v3 = vrot.slane %v1104_v63, 4  ;;  %v1192_v4 = vrot.slane %v1110_v0, 4  ;;  %v1175_v9 = vmax.f32 %v1101_v1, %v1174_v5  ;;  %v1187_v11 = vmax.f32 %v1107_v2, %v1186_v6 }
 0x2e4   : > { %v1235_v5 = vrot.slane %v1883_v33, %v1234_v34  ;;  %v1294_v6 = vunpack.c.0.s8 %v1293_v46 }
 0x2e5   : > { %v1181_v7 = vmax.f32 %v1104_v63, %v1180_v3  ;;  %v1193_v8 = vmax.f32 %v1110_v0, %v1192_v4  ;;  %v1176_v18 = vrot.slane %v1175_v9, 2  ;;  %v1188_v20 = vrot.slane %v1187_v11, 2 }
 0x2e7   : > { %v1182_v14 = vrot.slane %v1181_v7, 2  ;;  %v1194_v15 = vrot.slane %v1193_v8, 2  ;;  %v1177_v27 = vmax.f32 %v1175_v9, %v1176_v18  ;;  %v1189_v29 = vmax.f32 %v1187_v11, %v1188_v20 }
 0x2e9   : > { %v1183_v23 = vmax.f32 %v1181_v7, %v1182_v14  ;;  %v1195_v24 = vmax.f32 %v1193_v8, %v1194_v15  ;;  %v1178_v48 = vrot.slane %v1177_v27, 1  ;;  %v1190_v50 = vrot.slane %v1189_v29, 1 }
 0x2ea   : > { %v1250_v14 = vsub.s32 6, %v1877_v19 }
 0x2eb   : > { %v1184_v37 = vrot.slane %v1183_v23, 1  ;;  %v1196_v39 = vrot.slane %v1195_v24, 1  ;;  %v1179_v3 = vmax.f32 %v1177_v27, %v1178_v48  ;;  %v1191_v4 = vmax.f32 %v1189_v29, %v1190_v50 }
 0x2ec   : > { %v1297_v48 = vsub.s32 %v1294_v6, %v1877_v19 }
 0x2ed   : > { %v1185_v57 = vmax.f32 %v1183_v23, %v1184_v37  ;;  %v1197_v59 = vmax.f32 %v1195_v24, %v1196_v39  ;;  %v1264_v20 = vadd.f32 %v1227_v49, %v1179_v3  ;;  %v1254_v23 = vsub.s32 7, %v1877_v19 }
 0x2ef   : > { %v1265_v11 = vadd.f32 %v1231_v58, %v1185_v57  ;;  %v1272_v38 = vmax.f32 %v1264_v20, 0.0 }
 0x2f1   : > { %v1273_v28 = vmax.f32 %v1265_v11, 0.0 }
 0x2f2   : > { %v1027_v12 = vpop.f32.mrf.mxu0  ;;  %v1080_v13 = vpop.f32.mrf.mxu1 }
 0x2f4   : > { %v1029_v16 = vpop.f32.mrf.mxu0  ;;  %v1082_v17 = vpop.f32.mrf.mxu1 }
 0x2f6   : > { %v1031_v21 = vpop.f32.mrf.mxu0  ;;  %v1084_v22 = vpop.f32.mrf.mxu1 }
 0x2f7   : > { %v1111_v35 = vmax.f32 %v1027_v12, %v1031_v21  ;;  %v1117_v36 = vmax.f32 %v1080_v13, %v1084_v22  ;;  %v1267_v12 = vadd.f32 %v1239_v60, %v1197_v59  ;;  %v1242_v13 = vsub.s32 4, %v1877_v19 }
 0x2f8   : > { %v1033_v25 = vpop.f32.mrf.mxu0  ;;  %v1086_v26 = vpop.f32.mrf.mxu1  ;;  %v1266_v21 = vadd.f32 %v1235_v5, %v1191_v4  ;;  %v1246_v22 = vsub.s32 5, %v1877_v19 }
 0x2f9   : > { %v1114_v43 = vmax.f32 %v1029_v16, %v1033_v25  ;;  %v1120_v44 = vmax.f32 %v1082_v17, %v1086_v26  ;;  %v1275_v29 = vmax.f32 %v1267_v12, 0.0 }
 0x2fa   : > { %v1037_v30 = vpop.f32.mrf.mxu0  ;;  %v1090_v32 = vpop.f32.mrf.mxu1  ;;  %v1274_v39 = vmax.f32 %v1266_v21, 0.0  ;;  %v1247_v40 = vrot.slane %v1883_v33, %v1246_v22 }
 0x2fb   : > { %v1112_v45 = vmax.f32 %v1111_v35, %v1037_v30  ;;  %v1118_v47 = vmax.f32 %v1117_v36, %v1090_v32  ;;  %v1243_v30 = vrot.slane %v1883_v33, %v1242_v13  ;;  %v1251_v32 = vrot.slane %v1883_v33, %v1250_v14 }
 0x2fc   : > { %v1039_v41 = vpop.f32.mrf.mxu0  ;;  %v1092_v42 = vpop.f32.mrf.mxu1  ;;  %v1289_v49 = vcombine.low %v1274_v39, %v1275_v29 }
 0x2fd   : > { %v1115_v54 = vmax.f32 %v1114_v43, %v1039_v41  ;;  %v1121_v31 = vmax.f32 %v1120_v44, %v1092_v42  ;;  %v1255_v41 = vrot.slane %v1883_v33, %v1254_v23 }
 0x2fe   : > { %v1041_v52 = vpop.f32.mrf.mxu0  ;;  %v1094_v53 = vpop.f32.mrf.mxu1 }
 0x2ff   : > { %v1113_v55 = vmax.f32 %v1112_v45, %v1041_v52  ;;  %v1119_v56 = vmax.f32 %v1118_v47, %v1094_v53  ;;  %v1288_v47 = vcombine.low %v1272_v38, %v1273_v28 }
 0x300   : > { %v1043_v61 = vpop.f32.mrf.mxu0  ;;  %v1096_v62 = vpop.f32.mrf.mxu1 }
 0x301   : > { %v1198_v63 = vrot.slane %v1113_v55, 4  ;;  %v1210_v0 = vrot.slane %v1119_v56, 4  ;;  %v1116_v1 = vmax.f32 %v1115_v54, %v1043_v61  ;;  %v1122_v2 = vmax.f32 %v1121_v31, %v1096_v62 }
 0x302   : > { %v1298_v31 = vrot.slane %v1288_v47, %v1297_v48 }
 0x303   : > { %v1199_v7 = vmax.f32 %v1113_v55, %v1198_v63  ;;  %v1211_v8 = vmax.f32 %v1119_v56, %v1210_v0  ;;  %v1204_v9 = vrot.slane %v1116_v1, 4  ;;  %v1216_v10 = vrot.slane %v1122_v2, 4 }
 0x304   : > { %v1305_v55 = vrot.slane %v1289_v49, %v1297_v48 }
 0x305   : > { %v1200_v15 = vrot.slane %v1199_v7, 2  ;;  %v1212_v16 = vrot.slane %v1211_v8, 2  ;;  %v1205_v17 = vmax.f32 %v1116_v1, %v1204_v9  ;;  %v1217_v18 = vmax.f32 %v1122_v2, %v1216_v10 }
 0x306   : > { %v1320_v61 = vcombine.low %v1298_v31, %v1305_v55 }
 0x307   : > { %v1201_v24 = vmax.f32 %v1199_v7, %v1200_v15  ;;  %v1213_v25 = vmax.f32 %v1211_v8, %v1212_v16  ;;  %v1206_v26 = vrot.slane %v1205_v17, 2  ;;  %v1218_v27 = vrot.slane %v1217_v18, 2 }
 0x308   : > { %v1328_v0 = vrot.slane %v1320_v61, %v1297_v48 }
 0x309   : > { %v1202_v34 = vrot.slane %v1201_v24, 1  ;;  %v1214_v35 = vrot.slane %v1213_v25, 1  ;;  %v1207_v36 = vmax.f32 %v1205_v17, %v1206_v26  ;;  %v1219_v37 = vmax.f32 %v1217_v18, %v1218_v27 }
 0x30b   : > { %v1203_v42 = vmax.f32 %v1201_v24, %v1202_v34  ;;  %v1215_v43 = vmax.f32 %v1213_v25, %v1214_v35  ;;  %v1208_v44 = vrot.slane %v1207_v36, 1  ;;  %v1220_v45 = vrot.slane %v1219_v37, 1 }
 0x30d   : > { %v1268_v50 = vadd.f32 %v1243_v30, %v1203_v42  ;;  %v1270_v51 = vadd.f32 %v1251_v32, %v1215_v43  ;;  %v1209_v46 = vmax.f32 %v1207_v36, %v1208_v44  ;;  %v1221_v52 = vmax.f32 %v1219_v37, %v1220_v45 }
 0x30f   : > { %v1269_v53 = vadd.f32 %v1247_v40, %v1209_v46  ;;  %v1271_v54 = vadd.f32 %v1255_v41, %v1221_v52  ;;  %v1276_v56 = vmax.f32 %v1268_v50, 0.0  ;;  %v1278_v57 = vmax.f32 %v1270_v51, 0.0 }
 0x311   : > { %v1277_v33 = vmax.f32 %v1269_v53, 0.0  ;;  %v1279_v58 = vmax.f32 %v1271_v54, 0.0 }
 0x313   : > { %v1290_v59 = vcombine.low %v1276_v56, %v1277_v33  ;;  %v1291_v60 = vcombine.low %v1278_v57, %v1279_v58 }
 0x315   : > { %v1312_v62 = vrot.slane %v1290_v59, %v1297_v48  ;;  %v1319_v63 = vrot.slane %v1291_v60, %v1297_v48 }
 0x317   : > { %v1321_v19 = vcombine.low %v1312_v62, %v1319_v63 }
 0x319   : > { %v1335_v1 = vrot.slane %v1321_v19, %v1297_v48 }
 0x31b   : > { %v1336_v2 = vcombine.low %v1328_v0, %v1335_v1 }
 0x31d   : > { %1338 = vst [vmem:[%s299_s11] sm:$0xff] %v1336_v2 }
 0x31e PF: > { %s17_s26 = sadd.s32 1, %s1574_s26   ;;  %s1923_s24 = smov %s1570_s25 }
 0x31f   : > { %p14_p5 = scmp.ge.s32.totalorder %s17_s26, 4   ;;  %s1924_s25 = smov %s1926_s27 }
 0x321   :  { %16 = sbr.rel (!%p14_p5) target bundleno = 2 (0x2), region = 90 }

// kernel: stnkd_forward.3
= control target key start
LH: loop header
LB: loop body
LE: loop exit
PB: predicated region body
PF: predicated region fallthrough
CT: control target
= control target key end

     0   :  { %v3601_v36 = vmov 1983009808   ;;  %v34_v38 = vlaneseq  ;;  %s4798_s1 = inlined_call_operand.vmem [shape: bf16[1024,512], index: 1, kind: input, shape index: {}]   ;;  %s4799_s0 = inlined_call_operand.vmem [shape: f32[2,1024], index: 0, kind: input, shape index: {}]   ;;  %s4800_s3 = inlined_call_operand.vmem [shape: bf16[512,256], index: 3, kind: input, shape index: {}]   ;;  %s4801_s2 = inlined_call_operand.vmem [shape: f32[1,512], index: 2, kind: input, shape index: {}]   ;;  %s4802_s5 = inlined_call_operand.vmem [shape: bf16[256,256], index: 5, kind: input, shape index: {}]   ;;  %s4803_s4 = inlined_call_operand.vmem [shape: f32[1,256], index: 4, kind: input, shape index: {}]   ;;  %s4804_s6 = inlined_call_operand.vmem [shape: f32[1,256], index: 6, kind: input, shape index: {}]   ;;  %s4805_s7 = inlined_call_operand.vmem [shape: f32[2,256], index: 7, kind: output, shape index: {}]  }
   0x1   :  { %v3071_v0 = vld [vmem:[%s4798_s1 + $0xe4] ss:$16 sps:$4 sm:$0xff]   ;;  %v3075_v2 = vld [vmem:[%s4798_s1 + $0xe0] ss:$16 sps:$4 sm:$0xff]   ;;  %v32_v37 = vunpack.c.l.s4 %v3601_v36 }
   0x2   :  { %v3073_v1 = vld [vmem:[%s4798_s1 + $0x2e4] ss:$16 sps:$4 sm:$0xff]   ;;  %1638 = vmatprep.subr.bf16.mxu0 %v3071_v0  ;;  %v3076_v3 = vld [vmem:[%s4798_s1 + $0x2e0] ss:$16 sps:$4 sm:$0xff]   ;;  %v3759_v43 = vshrl.u32 %v34_v38, 7 }
   0x3   :  { %1679 = vmatprep.subr.bf16.mxu1 %v3073_v1  ;;  %v3077_v4 = vld [vmem:[%s4798_s1 + $0xc4] ss:$16 sps:$4 sm:$0xff]   ;;  %1639 = vmatpush1.bf16.msra.mxu0 %v3075_v2  ;;  %v3081_v6 = vld [vmem:[%s4798_s1 + $0xc0] ss:$16 sps:$4 sm:$0xff]   ;;  %v33_v42 = vunpack.c.0.s8 %v32_v37 }
   0x4   :  { %1680 = vmatpush1.bf16.msra.mxu1 %v3076_v3  ;;  %v3079_v5 = vld [vmem:[%s4798_s1 + $0x2c4] ss:$16 sps:$4 sm:$0xff]   ;;  %1640 = vmatprep.subr.bf16.mxu0 %v3077_v4  ;;  %v3082_v7 = vld [vmem:[%s4798_s1 + $0x2c0] ss:$16 sps:$4 sm:$0xff]   ;;  %v27_v4 = vld [vmem:[%s4799_s0 + $0x8] sm:$0xff] }
   0x5   :  { %1681 = vmatprep.subr.bf16.mxu1 %v3079_v5  ;;  %v3083_v8 = vld [vmem:[%s4798_s1 + $0xa4] ss:$16 sps:$4 sm:$0xff]   ;;  %v3087_v10 = vld [vmem:[%s4798_s1 + $0xa0] ss:$16 sps:$4 sm:$0xff]   ;;  %v36_v49 = vsub.s32 %v33_v42, %v3759_v43 }
   0x6   :  { %v3085_v9 = vld [vmem:[%s4798_s1 + $0x2a4] ss:$16 sps:$4 sm:$0xff]   ;;  %v3088_v11 = vld [vmem:[%s4798_s1 + $0x2a0] ss:$16 sps:$4 sm:$0xff]  }
   0x7   :  { %1641 = vmatpush1.bf16.msra.mxu0 %v3081_v6  ;;  %v3089_v12 = vld [vmem:[%s4798_s1 + $0x84] ss:$16 sps:$4 sm:$0xff]   ;;  %v3093_v14 = vld [vmem:[%s4798_s1 + $0x80] ss:$16 sps:$4 sm:$0xff]  }
   0x8   :  { %1682 = vmatpush1.bf16.msra.mxu1 %v3082_v7  ;;  %1642 = vmatprep.subr.bf16.mxu0 %v3083_v8  ;;  %v3091_v13 = vld [vmem:[%s4798_s1 + $0x284] ss:$16 sps:$4 sm:$0xff]   ;;  %v3094_v15 = vld [vmem:[%s4798_s1 + $0x280] ss:$16 sps:$4 sm:$0xff]  }
   0x9   :  { %1683 = vmatprep.subr.bf16.mxu1 %v3085_v9  ;;  %v3095_v16 = vld [vmem:[%s4798_s1 + $0x64] ss:$16 sps:$4 sm:$0xff]   ;;  %v3099_v18 = vld [vmem:[%s4798_s1 + $0x60] ss:$16 sps:$4 sm:$0xff]   ;;  %v47_v9 = vcombine.high %v27_v4, %v27_v4 }
   0xa   :  { %v3097_v17 = vld [vmem:[%s4798_s1 + $0x264] ss:$16 sps:$4 sm:$0xff]   ;;  %v3100_v19 = vld [vmem:[%s4798_s1 + $0x260] ss:$16 sps:$4 sm:$0xff]  }
   0xb   :  { %1643 = vmatpush1.bf16.msra.mxu0 %v3087_v10  ;;  %v3101_v20 = vld [vmem:[%s4798_s1 + $0x44] ss:$16 sps:$4 sm:$0xff]   ;;  %v3105_v22 = vld [vmem:[%s4798_s1 + $0x40] ss:$16 sps:$4 sm:$0xff]  }
   0xc   :  { %1684 = vmatpush1.bf16.msra.mxu1 %v3088_v11  ;;  %1644 = vmatprep.subr.bf16.mxu0 %v3089_v12  ;;  %v3103_v21 = vld [vmem:[%s4798_s1 + $0x244] ss:$16 sps:$4 sm:$0xff]   ;;  %v3106_v23 = vld [vmem:[%s4798_s1 + $0x240] ss:$16 sps:$4 sm:$0xff]  }
   0xd   :  { %1685 = vmatprep.subr.bf16.mxu1 %v3091_v13  ;;  %v3107_v24 = vld [vmem:[%s4798_s1 + $0x24] ss:$16 sps:$4 sm:$0xff]   ;;  %v3111_v26 = vld [vmem:[%s4798_s1 + $0x20] ss:$16 sps:$4 sm:$0xff]  }
   0xe   :  { %v3109_v25 = vld [vmem:[%s4798_s1 + $0x224] ss:$16 sps:$4 sm:$0xff]   ;;  %v3112_v27 = vld [vmem:[%s4798_s1 + $0x220] ss:$16 sps:$4 sm:$0xff]  }
   0xf   :  { %1645 = vmatpush1.bf16.msra.mxu0 %v3093_v14  ;;  %v3113_v28 = vld [vmem:[%s4798_s1 + $0x4] ss:$16 sps:$4 sm:$0xff]   ;;  %v3117_v30 = vld [vmem:[%s4798_s1] ss:$16 sps:$4 sm:$0xff]   ;;  %v3843_v14 = vrot.slane %v27_v4, %v36_v49 }
  0x10   :  { %1686 = vmatpush1.bf16.msra.mxu1 %v3094_v15  ;;  %1646 = vmatprep.subr.bf16.mxu0 %v3095_v16  ;;  %v3115_v29 = vld [vmem:[%s4798_s1 + $0x204] ss:$16 sps:$4 sm:$0xff]   ;;  %v3118_v31 = vld [vmem:[%s4798_s1 + $0x200] ss:$16 sps:$4 sm:$0xff]   ;;  %v3845_v15 = vrot.slane %v47_v9, %v36_v49 }
  0x11   :  { %1687 = vmatprep.subr.bf16.mxu1 %v3097_v17  ;;  %v3119_v32 = vld [vmem:[%s4798_s1 + $0x1e4] ss:$16 sps:$4 sm:$0xff]   ;;  %v3123_v34 = vld [vmem:[%s4798_s1 + $0x1e0] ss:$16 sps:$4 sm:$0xff]  }
  0x12   :  { %v3121_v33 = vld [vmem:[%s4798_s1 + $0x3e4] ss:$16 sps:$4 sm:$0xff]   ;;  %v3124_v35 = vld [vmem:[%s4798_s1 + $0x3e0] ss:$16 sps:$4 sm:$0xff]  }
  0x13   :  { %1647 = vmatpush1.bf16.msra.mxu0 %v3099_v18  ;;  %v3125_v39 = vld [vmem:[%s4798_s1 + $0x1c4] ss:$16 sps:$4 sm:$0xff]   ;;  %v3129_v41 = vld [vmem:[%s4798_s1 + $0x1c0] ss:$16 sps:$4 sm:$0xff]  }
  0x14   :  { %1688 = vmatpush1.bf16.msra.mxu1 %v3100_v19  ;;  %1648 = vmatprep.subr.bf16.mxu0 %v3101_v20  ;;  %v3127_v40 = vld [vmem:[%s4798_s1 + $0x3c4] ss:$16 sps:$4 sm:$0xff]   ;;  %v3130_v44 = vld [vmem:[%s4798_s1 + $0x3c0] ss:$16 sps:$4 sm:$0xff]   ;;  %v62_v20 = vcombine.high %v3843_v14, %v3843_v14 }
  0x15   :  { %1689 = vmatprep.subr.bf16.mxu1 %v3103_v21  ;;  %v3131_v45 = vld [vmem:[%s4798_s1 + $0x1a4] ss:$16 sps:$4 sm:$0xff]   ;;  %v3135_v47 = vld [vmem:[%s4798_s1 + $0x1a0] ss:$16 sps:$4 sm:$0xff]   ;;  %v63_v21 = vcombine.high %v3845_v15, %v3845_v15 }
  0x16   :  { %v3133_v46 = vld [vmem:[%s4798_s1 + $0x3a4] ss:$16 sps:$4 sm:$0xff]   ;;  %v3136_v48 = vld [vmem:[%s4798_s1 + $0x3a0] ss:$16 sps:$4 sm:$0xff]  }
  0x17   :  { %1649 = vmatpush1.bf16.msra.mxu0 %v3105_v22  ;;  %v3137_v50 = vld [vmem:[%s4798_s1 + $0x184] ss:$16 sps:$4 sm:$0xff]   ;;  %v3141_v55 = vld [vmem:[%s4798_s1 + $0x180] ss:$16 sps:$4 sm:$0xff]  }
  0x18   :  { %1690 = vmatpush1.bf16.msra.mxu1 %v3106_v23  ;;  %1650 = vmatprep.subr.bf16.mxu0 %v3107_v24  ;;  %v3139_v51 = vld [vmem:[%s4798_s1 + $0x384] ss:$16 sps:$4 sm:$0xff]   ;;  %v3142_v56 = vld [vmem:[%s4798_s1 + $0x380] ss:$16 sps:$4 sm:$0xff]  }
  0x19   :  { %1691 = vmatprep.subr.bf16.mxu1 %v3109_v25  ;;  %v26_v52 = vld [vmem:[%s4799_s0] sm:$0xff] }
  0x1a   :  { %v37_v53 = vrot.slane %v26_v52, %v36_v49  ;;  %v30_v54 = vcombine.high %v26_v52, %v26_v52  ;;  %v3143_v57 = vld [vmem:[%s4798_s1 + $0x164] ss:$16 sps:$4 sm:$0xff]   ;;  %v3147_v63 = vld [vmem:[%s4798_s1 + $0x160] ss:$16 sps:$4 sm:$0xff]  }
  0x1b   :  { %1651 = vmatpush1.bf16.msra.mxu0 %v3111_v26  ;;  %v3145_v58 = vld [vmem:[%s4798_s1 + $0x364] ss:$16 sps:$4 sm:$0xff]   ;;  %v3148_v0 = vld [vmem:[%s4798_s1 + $0x360] ss:$16 sps:$4 sm:$0xff]  }
  0x1c   :  { %1692 = vmatpush1.bf16.msra.mxu1 %v3112_v27  ;;  %1652 = vmatprep.subr.bf16.mxu0 %v3113_v28  ;;  %v45_v59 = vcombine.high %v37_v53, %v37_v53  ;;  %v44_v60 = vrot.slane %v30_v54, %v36_v49  ;;  %v3149_v1 = vld [vmem:[%s4798_s1 + $0x144] ss:$16 sps:$4 sm:$0xff]   ;;  %v3153_v5 = vld [vmem:[%s4798_s1 + $0x140] ss:$16 sps:$4 sm:$0xff]   ;;  %v3863_v22 = vpack.c.bf16 %v37_v53, %v37_v53 }
  0x1d   :  { %1693 = vmatprep.subr.bf16.mxu1 %v3115_v29  ;;  %v3151_v2 = vld [vmem:[%s4798_s1 + $0x344] ss:$16 sps:$4 sm:$0xff]   ;;  %v3154_v6 = vld [vmem:[%s4798_s1 + $0x340] ss:$16 sps:$4 sm:$0xff]   ;;  %v3879_v28 = vpack.c.bf16 %v62_v20, %v62_v20  ;;  %v3881_v29 = vpack.c.bf16 %v63_v21, %v63_v21 }
  0x1e   :  { %v3798_v61 = vpack.c.bf16 %v45_v59, %v45_v59  ;;  %v46_v62 = vcombine.high %v44_v60, %v44_v60  ;;  %v3155_v7 = vld [vmem:[%s4798_s1 + $0x124] ss:$16 sps:$4 sm:$0xff]   ;;  %v3159_v10 = vld [vmem:[%s4798_s1 + $0x120] ss:$16 sps:$4 sm:$0xff]   ;;  %v3865_v23 = vpack.c.bf16 %v44_v60, %v44_v60 }
  0x1f   :  { %1653 = vmatpush1.bf16.msra.mxu0 %v3117_v30  ;;  %v3157_v8 = vld [vmem:[%s4798_s1 + $0x324] ss:$16 sps:$4 sm:$0xff]   ;;  %v3160_v11 = vld [vmem:[%s4798_s1 + $0x320] ss:$16 sps:$4 sm:$0xff]  }
  0x20   :  { %1694 = vmatpush1.bf16.msra.mxu1 %v3118_v31  ;;  %1654 = vmatprep.subr.bf16.mxu0 %v3119_v32  ;;  %v3812_v3 = vpack.c.bf16 %v46_v62, %v46_v62  ;;  %v3161_v12 = vld [vmem:[%s4798_s1 + $0x104] ss:$16 sps:$4 sm:$0xff]   ;;  %v3165_v16 = vld [vmem:[%s4798_s1 + $0x100] ss:$16 sps:$4 sm:$0xff]  }
  0x21   :  { %1695 = vmatprep.subr.bf16.mxu1 %v3121_v33  ;;  %1670 = vmatprep.mubr.bf16.mxu0 %v3798_v61  ;;  %v3163_v13 = vld [vmem:[%s4798_s1 + $0x304] ss:$16 sps:$4 sm:$0xff]   ;;  %v3166_v17 = vld [vmem:[%s4798_s1 + $0x300] ss:$16 sps:$4 sm:$0xff]  }
  0x22   :  { %1711 = vmatprep.mubr.bf16.mxu1 %v3812_v3  ;;  %v3171_v18 = vld [vmem:[%s4798_s1 + $0x4e4] ss:$16 sps:$4 sm:$0xff]   ;;  %v3169_v24 = vld [vmem:[%s4798_s1 + $0x4e0] ss:$16 sps:$4 sm:$0xff]  }
  0x23   :  { %1655 = vmatpush2.bf16.msra.mxu0 %v3123_v34  ;;  %v3174_v19 = vld [vmem:[%s4798_s1 + $0x6e4] ss:$16 sps:$4 sm:$0xff]   ;;  %v3172_v25 = vld [vmem:[%s4798_s1 + $0x6e0] ss:$16 sps:$4 sm:$0xff]  }
  0x24   :  { %1696 = vmatpush2.bf16.msra.mxu1 %v3124_v35  ;;  %1656 = vmatprep.subr.bf16.mxu0 %v3125_v39  ;;  %v3177_v26 = vld [vmem:[%s4798_s1 + $0x4c4] ss:$16 sps:$4 sm:$0xff]   ;;  %v3175_v30 = vld [vmem:[%s4798_s1 + $0x4c0] ss:$16 sps:$4 sm:$0xff]  }
  0x25   :  { %1697 = vmatprep.subr.bf16.mxu1 %v3127_v40  ;;  %v3180_v27 = vld [vmem:[%s4798_s1 + $0x6c4] ss:$16 sps:$4 sm:$0xff]   ;;  %v3178_v31 = vld [vmem:[%s4798_s1 + $0x6c0] ss:$16 sps:$4 sm:$0xff]  }
  0x26   :  { %v3183_v32 = vld [vmem:[%s4798_s1 + $0x4a4] ss:$16 sps:$4 sm:$0xff]   ;;  %v3181_v34 = vld [vmem:[%s4798_s1 + $0x4a0] ss:$16 sps:$4 sm:$0xff]  }
  0x27   :  { %1657 = vmatpush2.bf16.msra.mxu0 %v3129_v41  ;;  %v3186_v33 = vld [vmem:[%s4798_s1 + $0x6a4] ss:$16 sps:$4 sm:$0xff]   ;;  %v3184_v35 = vld [vmem:[%s4798_s1 + $0x6a0] ss:$16 sps:$4 sm:$0xff]  }
  0x28   :  { %1698 = vmatpush2.bf16.msra.mxu1 %v3130_v44  ;;  %1658 = vmatprep.subr.bf16.mxu0 %v3131_v45  ;;  %v3189_v36 = vld [vmem:[%s4798_s1 + $0x484] ss:$16 sps:$4 sm:$0xff]   ;;  %v3187_v38 = vld [vmem:[%s4798_s1 + $0x480] ss:$16 sps:$4 sm:$0xff]  }
  0x29   :  { %1699 = vmatprep.subr.bf16.mxu1 %v3133_v46  ;;  %v3192_v37 = vld [vmem:[%s4798_s1 + $0x684] ss:$16 sps:$4 sm:$0xff]   ;;  %v3190_v39 = vld [vmem:[%s4798_s1 + $0x680] ss:$16 sps:$4 sm:$0xff]  }
  0x2a   :  { %v3195_v40 = vld [vmem:[%s4798_s1 + $0x464] ss:$16 sps:$4 sm:$0xff]   ;;  %v3193_v42 = vld [vmem:[%s4798_s1 + $0x460] ss:$16 sps:$4 sm:$0xff]  }
  0x2b   :  { %1659 = vmatpush2.bf16.msra.mxu0 %v3135_v47  ;;  %v3198_v41 = vld [vmem:[%s4798_s1 + $0x664] ss:$16 sps:$4 sm:$0xff]   ;;  %v3196_v44 = vld [vmem:[%s4798_s1 + $0x660] ss:$16 sps:$4 sm:$0xff]  }
  0x2c   :  { %1700 = vmatpush2.bf16.msra.mxu1 %v3136_v48  ;;  %1660 = vmatprep.subr.bf16.mxu0 %v3137_v50  ;;  %v3201_v45 = vld [vmem:[%s4798_s1 + $0x444] ss:$16 sps:$4 sm:$0xff]   ;;  %v3199_v47 = vld [vmem:[%s4798_s1 + $0x440] ss:$16 sps:$4 sm:$0xff]  }
  0x2d   :  { %1701 = vmatprep.subr.bf16.mxu1 %v3139_v51  ;;  %v3204_v46 = vld [vmem:[%s4798_s1 + $0x644] ss:$16 sps:$4 sm:$0xff]   ;;  %v3202_v48 = vld [vmem:[%s4798_s1 + $0x640] ss:$16 sps:$4 sm:$0xff]  }
  0x2e   :  { %v3207_v49 = vld [vmem:[%s4798_s1 + $0x424] ss:$16 sps:$4 sm:$0xff]   ;;  %v3205_v51 = vld [vmem:[%s4798_s1 + $0x420] ss:$16 sps:$4 sm:$0xff]  }
  0x2f   :  { %1661 = vmatpush2.bf16.msra.mxu0 %v3141_v55  ;;  %v3210_v50 = vld [vmem:[%s4798_s1 + $0x624] ss:$16 sps:$4 sm:$0xff]   ;;  %v3208_v52 = vld [vmem:[%s4798_s1 + $0x620] ss:$16 sps:$4 sm:$0xff]  }
  0x30   :  { %1702 = vmatpush2.bf16.msra.mxu1 %v3142_v56  ;;  %1662 = vmatprep.subr.bf16.mxu0 %v3143_v57  ;;  %v3213_v53 = vld [vmem:[%s4798_s1 + $0x404] ss:$16 sps:$4 sm:$0xff]   ;;  %v3211_v55 = vld [vmem:[%s4798_s1 + $0x400] ss:$16 sps:$4 sm:$0xff]  }
  0x31   :  { %1703 = vmatprep.subr.bf16.mxu1 %v3145_v58  ;;  %v3216_v54 = vld [vmem:[%s4798_s1 + $0x604] ss:$16 sps:$4 sm:$0xff]   ;;  %v3214_v56 = vld [vmem:[%s4798_s1 + $0x600] ss:$16 sps:$4 sm:$0xff]  }
  0x32   :  { %v3219_v57 = vld [vmem:[%s4798_s1 + $0x5e4] ss:$16 sps:$4 sm:$0xff]   ;;  %v3217_v59 = vld [vmem:[%s4798_s1 + $0x5e0] ss:$16 sps:$4 sm:$0xff]  }
  0x33   :  { %1663 = vmatpush2.bf16.msra.mxu0 %v3147_v63  ;;  %v3222_v58 = vld [vmem:[%s4798_s1 + $0x7e4] ss:$16 sps:$4 sm:$0xff]   ;;  %v3220_v60 = vld [vmem:[%s4798_s1 + $0x7e0] ss:$16 sps:$4 sm:$0xff]  }
  0x34   :  { %1704 = vmatpush2.bf16.msra.mxu1 %v3148_v0  ;;  %1664 = vmatprep.subr.bf16.mxu0 %v3149_v1  ;;  %v3225_v62 = vld [vmem:[%s4798_s1 + $0x5c4] ss:$16 sps:$4 sm:$0xff]   ;;  %v3223_v0 = vld [vmem:[%s4798_s1 + $0x5c0] ss:$16 sps:$4 sm:$0xff]  }
  0x35   :  { %1705 = vmatprep.subr.bf16.mxu1 %v3151_v2  ;;  %v3228_v63 = vld [vmem:[%s4798_s1 + $0x7c4] ss:$16 sps:$4 sm:$0xff]   ;;  %v3226_v1 = vld [vmem:[%s4798_s1 + $0x7c0] ss:$16 sps:$4 sm:$0xff]  }
  0x36   :  { %v3231_v2 = vld [vmem:[%s4798_s1 + $0x5a4] ss:$16 sps:$4 sm:$0xff]   ;;  %v3235_v9 = vld [vmem:[%s4798_s1 + $0x580] ss:$16 sps:$4 sm:$0xff]  }
  0x37   :  { %1665 = vmatpush2.bf16.msra.mxu0 %v3153_v5  ;;  %v3234_v4 = vld [vmem:[%s4798_s1 + $0x7a4] ss:$16 sps:$4 sm:$0xff]   ;;  %v3229_v5 = vld [vmem:[%s4798_s1 + $0x5a0] ss:$16 sps:$4 sm:$0xff]  }
  0x38   :  { %1706 = vmatpush2.bf16.msra.mxu1 %v3154_v6  ;;  %1666 = vmatprep.subr.bf16.mxu0 %v3155_v7  ;;  %v3232_v6 = vld [vmem:[%s4798_s1 + $0x7a0] ss:$16 sps:$4 sm:$0xff]   ;;  %v3237_v7 = vld [vmem:[%s4798_s1 + $0x584] ss:$16 sps:$4 sm:$0xff]  }
  0x39   :  { %1707 = vmatprep.subr.bf16.mxu1 %v3157_v8  ;;  %v3240_v8 = vld [vmem:[%s4798_s1 + $0x784] ss:$16 sps:$4 sm:$0xff]   ;;  %v3250_v20 = vld [vmem:[%s4798_s1 + $0x740] ss:$16 sps:$4 sm:$0xff]  }
  0x3a   :  { %v3255_v21 = vld [vmem:[%s4798_s1 + $0x524] ss:$16 sps:$4 sm:$0xff]  }
  0x3b   :  { %1667 = vmatpush2.bf16.msra.mxu0 %v3159_v10  ;;  %v3238_v10 = vld [vmem:[%s4798_s1 + $0x780] ss:$16 sps:$4 sm:$0xff]  }
  0x3c   :  { %1708 = vmatpush2.bf16.msra.mxu1 %v3160_v11  ;;  %1668 = vmatprep.subr.bf16.mxu0 %v3161_v12  ;;  %v3243_v11 = vld [vmem:[%s4798_s1 + $0x564] ss:$16 sps:$4 sm:$0xff]  }
  0x3d   :  { %1709 = vmatprep.subr.bf16.mxu1 %v3163_v13  ;;  %v3246_v12 = vld [vmem:[%s4798_s1 + $0x764] ss:$16 sps:$4 sm:$0xff]   ;;  %v3241_v13 = vld [vmem:[%s4798_s1 + $0x560] ss:$16 sps:$4 sm:$0xff]  }
  0x3f   :  { %1669 = vmatpush2.bf16.msra.mxu0 %v3165_v16  ;;  %v3244_v16 = vld [vmem:[%s4798_s1 + $0x760] ss:$16 sps:$4 sm:$0xff]  }
  0x40   :  { %1710 = vmatpush2.bf16.msra.mxu1 %v3166_v17  ;;  %1720 = vmatprep.subr.bf16.mxu0 %v3171_v18  ;;  %v3249_v17 = vld [vmem:[%s4798_s1 + $0x544] ss:$16 sps:$4 sm:$0xff]  }
  0x41   :  { %1761 = vmatprep.subr.bf16.mxu1 %v3174_v19  ;;  %v3252_v18 = vld [vmem:[%s4798_s1 + $0x744] ss:$16 sps:$4 sm:$0xff]   ;;  %v3247_v19 = vld [vmem:[%s4798_s1 + $0x540] ss:$16 sps:$4 sm:$0xff]  }
  0x42   :  { %1671 = vmatmul.mubr.bf16.vlgmr.msra.gmra.mxu0 %v3863_v22 }
  0x43   :  { %1712 = vmatmul.mubr.bf16.vlgmr.msra.gmra.mxu1 %v3865_v23  ;;  %1721 = vmatpush1.bf16.msra.mxu0 %v3169_v24  ;;  %v3258_v24 = vld [vmem:[%s4798_s1 + $0x724] ss:$16 sps:$4 sm:$0xff]  }
  0x44   :  { %1762 = vmatpush1.bf16.msra.mxu1 %v3172_v25  ;;  %1722 = vmatprep.subr.bf16.mxu0 %v3177_v26  ;;  %v3253_v25 = vld [vmem:[%s4798_s1 + $0x520] ss:$16 sps:$4 sm:$0xff]  }
  0x45   :  { %1763 = vmatprep.subr.bf16.mxu1 %v3180_v27  ;;  %1752 = vmatprep.mubr.bf16.mxu0 %v3879_v28  ;;  %v3256_v26 = vld [vmem:[%s4798_s1 + $0x720] ss:$16 sps:$4 sm:$0xff]   ;;  %v3261_v27 = vld [vmem:[%s4798_s1 + $0x504] ss:$16 sps:$4 sm:$0xff]  }
  0x46   :  { %1793 = vmatprep.mubr.bf16.mxu1 %v3881_v29 }
  0x47   :  { %1723 = vmatpush1.bf16.msra.mxu0 %v3175_v30  ;;  %v3264_v30 = vld [vmem:[%s4798_s1 + $0x704] ss:$16 sps:$4 sm:$0xff]  }
  0x48   :  { %1764 = vmatpush1.bf16.msra.mxu1 %v3178_v31  ;;  %1724 = vmatprep.subr.bf16.mxu0 %v3183_v32  ;;  %v3259_v31 = vld [vmem:[%s4798_s1 + $0x500] ss:$16 sps:$4 sm:$0xff]  }
  0x49   :  { %1765 = vmatprep.subr.bf16.mxu1 %v3186_v33  ;;  %v3262_v32 = vld [vmem:[%s4798_s1 + $0x700] ss:$16 sps:$4 sm:$0xff]   ;;  %v3267_v33 = vld [vmem:[%s4798_s1 + $0xec] ss:$16 sps:$4 sm:$0xff]  }
  0x4b   :  { %1725 = vmatpush1.bf16.msra.mxu0 %v3181_v34  ;;  %v3270_v34 = vld [vmem:[%s4798_s1 + $0x2ec] ss:$16 sps:$4 sm:$0xff]  }
  0x4c   :  { %1766 = vmatpush1.bf16.msra.mxu1 %v3184_v35  ;;  %1726 = vmatprep.subr.bf16.mxu0 %v3189_v36  ;;  %v4069_v35 = vpack.c.bf16 %v3843_v14, %v3843_v14  ;;  %v4073_v36 = vpack.c.bf16 %v3845_v15, %v3845_v15  ;;  %v3273_v14 = vld [vmem:[%s4798_s1 + $0xcc] ss:$16 sps:$4 sm:$0xff]  }
  0x4d   :  { %1767 = vmatprep.subr.bf16.mxu1 %v3192_v37  ;;  %v3265_v37 = vld [vmem:[%s4798_s1 + $0xe8] ss:$16 sps:$4 sm:$0xff]   ;;  %v3276_v15 = vld [vmem:[%s4798_s1 + $0x2cc] ss:$16 sps:$4 sm:$0xff]  }
  0x4f   :  { %1727 = vmatpush1.bf16.msra.mxu0 %v3187_v38  ;;  %v3268_v38 = vld [vmem:[%s4798_s1 + $0x2e8] ss:$16 sps:$4 sm:$0xff]  }
  0x50   :  { %1768 = vmatpush1.bf16.msra.mxu1 %v3190_v39  ;;  %1728 = vmatprep.subr.bf16.mxu0 %v3195_v40  ;;  %v3271_v39 = vld [vmem:[%s4798_s1 + $0xc8] ss:$16 sps:$4 sm:$0xff]  }
  0x51   :  { %1769 = vmatprep.subr.bf16.mxu1 %v3198_v41  ;;  %v3274_v40 = vld [vmem:[%s4798_s1 + $0x2c8] ss:$16 sps:$4 sm:$0xff]   ;;  %v3279_v41 = vld [vmem:[%s4798_s1 + $0xac] ss:$16 sps:$4 sm:$0xff]  }
  0x53   :  { %1729 = vmatpush1.bf16.msra.mxu0 %v3193_v42  ;;  %v3282_v42 = vld [vmem:[%s4798_s1 + $0x2ac] ss:$16 sps:$4 sm:$0xff]  }
  0x54   :  { %1770 = vmatpush1.bf16.msra.mxu1 %v3196_v44  ;;  %1730 = vmatprep.subr.bf16.mxu0 %v3201_v45  ;;  %v3277_v44 = vld [vmem:[%s4798_s1 + $0xa8] ss:$16 sps:$4 sm:$0xff]  }
  0x55   :  { %1771 = vmatprep.subr.bf16.mxu1 %v3204_v46  ;;  %v3280_v45 = vld [vmem:[%s4798_s1 + $0x2a8] ss:$16 sps:$4 sm:$0xff]   ;;  %v3285_v46 = vld [vmem:[%s4798_s1 + $0x8c] ss:$16 sps:$4 sm:$0xff]  }
  0x57   :  { %1731 = vmatpush1.bf16.msra.mxu0 %v3199_v47  ;;  %v3286_v47 = vld [vmem:[%s4798_s1 + $0x288] ss:$16 sps:$4 sm:$0xff]  }
  0x58   :  { %1772 = vmatpush1.bf16.msra.mxu1 %v3202_v48  ;;  %1732 = vmatprep.subr.bf16.mxu0 %v3207_v49  ;;  %v3291_v48 = vld [vmem:[%s4798_s1 + $0x6c] ss:$16 sps:$4 sm:$0xff]  }
  0x59   :  { %1773 = vmatprep.subr.bf16.mxu1 %v3210_v50  ;;  %v3294_v49 = vld [vmem:[%s4798_s1 + $0x26c] ss:$16 sps:$4 sm:$0xff]   ;;  %v3289_v50 = vld [vmem:[%s4798_s1 + $0x68] ss:$16 sps:$4 sm:$0xff]  }
  0x5b   :  { %1733 = vmatpush1.bf16.msra.mxu0 %v3205_v51  ;;  %v3292_v51 = vld [vmem:[%s4798_s1 + $0x268] ss:$16 sps:$4 sm:$0xff]  }
  0x5c   :  { %1774 = vmatpush1.bf16.msra.mxu1 %v3208_v52  ;;  %1734 = vmatprep.subr.bf16.mxu0 %v3213_v53  ;;  %v3297_v52 = vld [vmem:[%s4798_s1 + $0x4c] ss:$16 sps:$4 sm:$0xff]  }
  0x5d   :  { %1775 = vmatprep.subr.bf16.mxu1 %v3216_v54  ;;  %v3300_v53 = vld [vmem:[%s4798_s1 + $0x24c] ss:$16 sps:$4 sm:$0xff]   ;;  %v3295_v54 = vld [vmem:[%s4798_s1 + $0x48] ss:$16 sps:$4 sm:$0xff]  }
  0x5f   :  { %1735 = vmatpush1.bf16.msra.mxu0 %v3211_v55  ;;  %v3298_v55 = vld [vmem:[%s4798_s1 + $0x248] ss:$16 sps:$4 sm:$0xff]  }
  0x60   :  { %1776 = vmatpush1.bf16.msra.mxu1 %v3214_v56  ;;  %1736 = vmatprep.subr.bf16.mxu0 %v3219_v57  ;;  %v3303_v56 = vld [vmem:[%s4798_s1 + $0x2c] ss:$16 sps:$4 sm:$0xff]  }
  0x61   :  { %1777 = vmatprep.subr.bf16.mxu1 %v3222_v58  ;;  %v3306_v57 = vld [vmem:[%s4798_s1 + $0x22c] ss:$16 sps:$4 sm:$0xff]   ;;  %v3301_v58 = vld [vmem:[%s4798_s1 + $0x28] ss:$16 sps:$4 sm:$0xff]  }
  0x63   :  { %1737 = vmatpush2.bf16.msra.mxu0 %v3217_v59  ;;  %v3304_v59 = vld [vmem:[%s4798_s1 + $0x228] ss:$16 sps:$4 sm:$0xff]  }
  0x64   :  { %1778 = vmatpush2.bf16.msra.mxu1 %v3220_v60  ;;  %1738 = vmatprep.subr.bf16.mxu0 %v3225_v62  ;;  %v3309_v60 = vld [vmem:[%s4798_s1 + $0xc] ss:$16 sps:$4 sm:$0xff]  }
  0x65   :  { %1779 = vmatprep.subr.bf16.mxu1 %v3228_v63  ;;  %v3312_v62 = vld [vmem:[%s4798_s1 + $0x20c] ss:$16 sps:$4 sm:$0xff]   ;;  %v3307_v63 = vld [vmem:[%s4798_s1 + $0x8] ss:$16 sps:$4 sm:$0xff]  }
  0x67   :  { %1739 = vmatpush2.bf16.msra.mxu0 %v3223_v0  ;;  %v3310_v0 = vld [vmem:[%s4798_s1 + $0x208] ss:$16 sps:$4 sm:$0xff]  }
  0x68   :  { %1780 = vmatpush2.bf16.msra.mxu1 %v3226_v1  ;;  %1740 = vmatprep.subr.bf16.mxu0 %v3231_v2  ;;  %v3315_v1 = vld [vmem:[%s4798_s1 + $0x1ec] ss:$16 sps:$4 sm:$0xff]  }
  0x69   :  { %1781 = vmatprep.subr.bf16.mxu1 %v3234_v4  ;;  %v3318_v2 = vld [vmem:[%s4798_s1 + $0x3ec] ss:$16 sps:$4 sm:$0xff]   ;;  %v3313_v4 = vld [vmem:[%s4798_s1 + $0x1e8] ss:$16 sps:$4 sm:$0xff]  }
  0x6b   :  { %1741 = vmatpush2.bf16.msra.mxu0 %v3229_v5  ;;  %v3316_v5 = vld [vmem:[%s4798_s1 + $0x3e8] ss:$16 sps:$4 sm:$0xff]  }
  0x6c   :  { %1782 = vmatpush2.bf16.msra.mxu1 %v3232_v6  ;;  %1742 = vmatprep.subr.bf16.mxu0 %v3237_v7  ;;  %v3321_v6 = vld [vmem:[%s4798_s1 + $0x1cc] ss:$16 sps:$4 sm:$0xff]  }
  0x6d   :  { %1783 = vmatprep.subr.bf16.mxu1 %v3240_v8  ;;  %v3324_v7 = vld [vmem:[%s4798_s1 + $0x3cc] ss:$16 sps:$4 sm:$0xff]   ;;  %v3319_v8 = vld [vmem:[%s4798_s1 + $0x1c8] ss:$16 sps:$4 sm:$0xff]  }
  0x6f   :  { %1743 = vmatpush2.bf16.msra.mxu0 %v3235_v9  ;;  %v3322_v9 = vld [vmem:[%s4798_s1 + $0x3c8] ss:$16 sps:$4 sm:$0xff]  }
  0x70   :  { %1784 = vmatpush2.bf16.msra.mxu1 %v3238_v10  ;;  %1744 = vmatprep.subr.bf16.mxu0 %v3243_v11  ;;  %v3327_v10 = vld [vmem:[%s4798_s1 + $0x1ac] ss:$16 sps:$4 sm:$0xff]  }
  0x71   :  { %1785 = vmatprep.subr.bf16.mxu1 %v3246_v12  ;;  %v3330_v11 = vld [vmem:[%s4798_s1 + $0x3ac] ss:$16 sps:$4 sm:$0xff]   ;;  %v3325_v12 = vld [vmem:[%s4798_s1 + $0x1a8] ss:$16 sps:$4 sm:$0xff]  }
  0x73   :  { %1745 = vmatpush2.bf16.msra.mxu0 %v3241_v13  ;;  %v3328_v13 = vld [vmem:[%s4798_s1 + $0x3a8] ss:$16 sps:$4 sm:$0xff]  }
  0x74   :  { %1786 = vmatpush2.bf16.msra.mxu1 %v3244_v16  ;;  %1746 = vmatprep.subr.bf16.mxu0 %v3249_v17  ;;  %v3333_v16 = vld [vmem:[%s4798_s1 + $0x18c] ss:$16 sps:$4 sm:$0xff]  }
  0x75   :  { %1787 = vmatprep.subr.bf16.mxu1 %v3252_v18  ;;  %v3336_v17 = vld [vmem:[%s4798_s1 + $0x38c] ss:$16 sps:$4 sm:$0xff]   ;;  %v3331_v18 = vld [vmem:[%s4798_s1 + $0x188] ss:$16 sps:$4 sm:$0xff]  }
  0x77   :  { %1747 = vmatpush2.bf16.msra.mxu0 %v3247_v19  ;;  %v3334_v19 = vld [vmem:[%s4798_s1 + $0x388] ss:$16 sps:$4 sm:$0xff]  }
  0x78   :  { %1788 = vmatpush2.bf16.msra.mxu1 %v3250_v20  ;;  %1748 = vmatprep.subr.bf16.mxu0 %v3255_v21  ;;  %v3339_v20 = vld [vmem:[%s4798_s1 + $0x16c] ss:$16 sps:$4 sm:$0xff]  }
  0x79   :  { %1789 = vmatprep.subr.bf16.mxu1 %v3258_v24  ;;  %v3342_v21 = vld [vmem:[%s4798_s1 + $0x36c] ss:$16 sps:$4 sm:$0xff]   ;;  %v3337_v24 = vld [vmem:[%s4798_s1 + $0x168] ss:$16 sps:$4 sm:$0xff]  }
  0x7b   :  { %1749 = vmatpush2.bf16.msra.mxu0 %v3253_v25  ;;  %v3340_v25 = vld [vmem:[%s4798_s1 + $0x368] ss:$16 sps:$4 sm:$0xff]  }
  0x7c   :  { %1790 = vmatpush2.bf16.msra.mxu1 %v3256_v26  ;;  %1750 = vmatprep.subr.bf16.mxu0 %v3261_v27  ;;  %v3345_v26 = vld [vmem:[%s4798_s1 + $0x14c] ss:$16 sps:$4 sm:$0xff]  }
  0x7d   :  { %1791 = vmatprep.subr.bf16.mxu1 %v3264_v30  ;;  %v3348_v27 = vld [vmem:[%s4798_s1 + $0x34c] ss:$16 sps:$4 sm:$0xff]   ;;  %v3343_v30 = vld [vmem:[%s4798_s1 + $0x148] ss:$16 sps:$4 sm:$0xff]  }
  0x7f   :  { %1751 = vmatpush2.bf16.msra.mxu0 %v3259_v31  ;;  %v3346_v31 = vld [vmem:[%s4798_s1 + $0x348] ss:$16 sps:$4 sm:$0xff]  }
  0x80   :  { %1792 = vmatpush2.bf16.msra.mxu1 %v3262_v32  ;;  %1802 = vmatprep.subr.bf16.mxu0 %v3267_v33  ;;  %v3351_v32 = vld [vmem:[%s4798_s1 + $0x12c] ss:$16 sps:$4 sm:$0xff]  }
  0x81   :  { %1843 = vmatprep.subr.bf16.mxu1 %v3270_v34  ;;  %v3354_v33 = vld [vmem:[%s4798_s1 + $0x32c] ss:$16 sps:$4 sm:$0xff]   ;;  %v3349_v34 = vld [vmem:[%s4798_s1 + $0x128] ss:$16 sps:$4 sm:$0xff]  }
  0x82   :  { %1753 = vmatmul.mubr.bf16.vlgmr.msra.gmra.mxu0 %v4069_v35 }
  0x83   :  { %1794 = vmatmul.mubr.bf16.vlgmr.msra.gmra.mxu1 %v4073_v36  ;;  %1803 = vmatpush1.bf16.msra.mxu0 %v3265_v37  ;;  %v3352_v37 = vld [vmem:[%s4798_s1 + $0x328] ss:$16 sps:$4 sm:$0xff]  }
  0x84   :  { %1844 = vmatpush1.bf16.msra.mxu1 %v3268_v38  ;;  %1804 = vmatprep.subr.bf16.mxu0 %v3273_v14  ;;  %v3357_v38 = vld [vmem:[%s4798_s1 + $0x10c] ss:$16 sps:$4 sm:$0xff]  }
  0x85   :  { %1845 = vmatprep.subr.bf16.mxu1 %v3276_v15  ;;  %1834 = vmatprep.mubr.bf16.mxu0 %v3798_v61  ;;  %v3288_v61 = vld [vmem:[%s4798_s1 + $0x28c] ss:$16 sps:$4 sm:$0xff]   ;;  %v3355_v15 = vld [vmem:[%s4798_s1 + $0x108] ss:$16 sps:$4 sm:$0xff]  }
  0x86   :  { %1875 = vmatprep.mubr.bf16.mxu1 %v3812_v3  ;;  %v3283_v3 = vld [vmem:[%s4798_s1 + $0x88] ss:$16 sps:$4 sm:$0xff]   ;;  %v3360_v14 = vld [vmem:[%s4798_s1 + $0x30c] ss:$16 sps:$4 sm:$0xff]  }
  0x87   :  { %1805 = vmatpush1.bf16.msra.mxu0 %v3271_v39  ;;  %v3358_v39 = vld [vmem:[%s4798_s1 + $0x308] ss:$16 sps:$4 sm:$0xff]  }
  0x88   :  { %1846 = vmatpush1.bf16.msra.mxu1 %v3274_v40  ;;  %1806 = vmatprep.subr.bf16.mxu0 %v3279_v41  ;;  %v3363_v40 = vld [vmem:[%s4798_s1 + $0x4ec] ss:$16 sps:$4 sm:$0xff]  }
  0x89   :  { %1847 = vmatprep.subr.bf16.mxu1 %v3282_v42  ;;  %v3366_v41 = vld [vmem:[%s4798_s1 + $0x6ec] ss:$16 sps:$4 sm:$0xff]   ;;  %v3361_v42 = vld [vmem:[%s4798_s1 + $0x4e8] ss:$16 sps:$4 sm:$0xff]  }
  0x8b   :  { %1807 = vmatpush1.bf16.msra.mxu0 %v3277_v44  ;;  %v3364_v44 = vld [vmem:[%s4798_s1 + $0x6e8] ss:$16 sps:$4 sm:$0xff]  }
  0x8c   :  { %1848 = vmatpush1.bf16.msra.mxu1 %v3280_v45  ;;  %1808 = vmatprep.subr.bf16.mxu0 %v3285_v46  ;;  %v3369_v45 = vld [vmem:[%s4798_s1 + $0x4cc] ss:$16 sps:$4 sm:$0xff]  }
  0x8d   :  { %1849 = vmatprep.subr.bf16.mxu1 %v3288_v61  ;;  %v3372_v46 = vld [vmem:[%s4798_s1 + $0x6cc] ss:$16 sps:$4 sm:$0xff]   ;;  %v3367_v61 = vld [vmem:[%s4798_s1 + $0x4c8] ss:$16 sps:$4 sm:$0xff]  }
  0x8f   :  { %1809 = vmatpush1.bf16.msra.mxu0 %v3283_v3  ;;  %v3370_v3 = vld [vmem:[%s4798_s1 + $0x6c8] ss:$16 sps:$4 sm:$0xff]  }
  0x90   :  { %1850 = vmatpush1.bf16.msra.mxu1 %v3286_v47  ;;  %1810 = vmatprep.subr.bf16.mxu0 %v3291_v48  ;;  %v3375_v47 = vld [vmem:[%s4798_s1 + $0x4ac] ss:$16 sps:$4 sm:$0xff]  }
  0x91   :  { %1851 = vmatprep.subr.bf16.mxu1 %v3294_v49  ;;  %v3378_v48 = vld [vmem:[%s4798_s1 + $0x6ac] ss:$16 sps:$4 sm:$0xff]   ;;  %v3373_v49 = vld [vmem:[%s4798_s1 + $0x4a8] ss:$16 sps:$4 sm:$0xff]  }
  0x93   :  { %1811 = vmatpush1.bf16.msra.mxu0 %v3289_v50  ;;  %v3384_v50 = vld [vmem:[%s4798_s1 + $0x68c] ss:$16 sps:$4 sm:$0xff]  }
  0x94   :  { %1852 = vmatpush1.bf16.msra.mxu1 %v3292_v51  ;;  %1812 = vmatprep.subr.bf16.mxu0 %v3297_v52  ;;  %v3387_v51 = vld [vmem:[%s4798_s1 + $0x46c] ss:$16 sps:$4 sm:$0xff]  }
  0x95   :  { %1853 = vmatprep.subr.bf16.mxu1 %v3300_v53  ;;  %v3390_v52 = vld [vmem:[%s4798_s1 + $0x66c] ss:$16 sps:$4 sm:$0xff]   ;;  %v3385_v53 = vld [vmem:[%s4798_s1 + $0x468] ss:$16 sps:$4 sm:$0xff]  }
  0x97   :  { %1813 = vmatpush1.bf16.msra.mxu0 %v3295_v54  ;;  %v3388_v54 = vld [vmem:[%s4798_s1 + $0x668] ss:$16 sps:$4 sm:$0xff]  }
  0x98   :  { %1854 = vmatpush1.bf16.msra.mxu1 %v3298_v55  ;;  %1814 = vmatprep.subr.bf16.mxu0 %v3303_v56  ;;  %v3393_v55 = vld [vmem:[%s4798_s1 + $0x44c] ss:$16 sps:$4 sm:$0xff]  }
  0x99   :  { %1855 = vmatprep.subr.bf16.mxu1 %v3306_v57  ;;  %v3396_v56 = vld [vmem:[%s4798_s1 + $0x64c] ss:$16 sps:$4 sm:$0xff]   ;;  %v3391_v57 = vld [vmem:[%s4798_s1 + $0x448] ss:$16 sps:$4 sm:$0xff]  }
  0x9b   :  { %1815 = vmatpush1.bf16.msra.mxu0 %v3301_v58  ;;  %v3394_v58 = vld [vmem:[%s4798_s1 + $0x648] ss:$16 sps:$4 sm:$0xff]  }
  0x9c   :  { %1856 = vmatpush1.bf16.msra.mxu1 %v3304_v59  ;;  %1816 = vmatprep.subr.bf16.mxu0 %v3309_v60  ;;  %v3399_v59 = vld [vmem:[%s4798_s1 + $0x42c] ss:$16 sps:$4 sm:$0xff]  }
  0x9d   :  { %1857 = vmatprep.subr.bf16.mxu1 %v3312_v62  ;;  %v3402_v60 = vld [vmem:[%s4798_s1 + $0x62c] ss:$16 sps:$4 sm:$0xff]   ;;  %v3397_v62 = vld [vmem:[%s4798_s1 + $0x428] ss:$16 sps:$4 sm:$0xff]  }
  0x9f   :  { %1817 = vmatpush1.bf16.msra.mxu0 %v3307_v63  ;;  %v3400_v63 = vld [vmem:[%s4798_s1 + $0x628] ss:$16 sps:$4 sm:$0xff]  }
  0xa0   :  { %1858 = vmatpush1.bf16.msra.mxu1 %v3310_v0  ;;  %1818 = vmatprep.subr.bf16.mxu0 %v3315_v1  ;;  %v3405_v0 = vld [vmem:[%s4798_s1 + $0x40c] ss:$16 sps:$4 sm:$0xff]  }
  0xa1   :  { %1859 = vmatprep.subr.bf16.mxu1 %v3318_v2  ;;  %v3408_v1 = vld [vmem:[%s4798_s1 + $0x60c] ss:$16 sps:$4 sm:$0xff]   ;;  %v3403_v2 = vld [vmem:[%s4798_s1 + $0x408] ss:$16 sps:$4 sm:$0xff]  }
  0xa3   :  { %1819 = vmatpush2.bf16.msra.mxu0 %v3313_v4  ;;  %v3406_v4 = vld [vmem:[%s4798_s1 + $0x608] ss:$16 sps:$4 sm:$0xff]  }
  0xa4   :  { %1860 = vmatpush2.bf16.msra.mxu1 %v3316_v5  ;;  %1820 = vmatprep.subr.bf16.mxu0 %v3321_v6  ;;  %v3411_v5 = vld [vmem:[%s4798_s1 + $0x5ec] ss:$16 sps:$4 sm:$0xff]  }
  0xa5   :  { %1861 = vmatprep.subr.bf16.mxu1 %v3324_v7  ;;  %v3414_v6 = vld [vmem:[%s4798_s1 + $0x7ec] ss:$16 sps:$4 sm:$0xff]   ;;  %v3409_v7 = vld [vmem:[%s4798_s1 + $0x5e8] ss:$16 sps:$4 sm:$0xff]  }
  0xa7   :  { %1821 = vmatpush2.bf16.msra.mxu0 %v3319_v8  ;;  %v3412_v8 = vld [vmem:[%s4798_s1 + $0x7e8] ss:$16 sps:$4 sm:$0xff]  }
  0xa8   :  { %1862 = vmatpush2.bf16.msra.mxu1 %v3322_v9  ;;  %1822 = vmatprep.subr.bf16.mxu0 %v3327_v10  ;;  %v3417_v9 = vld [vmem:[%s4798_s1 + $0x5cc] ss:$16 sps:$4 sm:$0xff]  }
  0xa9   :  { %1863 = vmatprep.subr.bf16.mxu1 %v3330_v11  ;;  %v3420_v10 = vld [vmem:[%s4798_s1 + $0x7cc] ss:$16 sps:$4 sm:$0xff]   ;;  %v3415_v11 = vld [vmem:[%s4798_s1 + $0x5c8] ss:$16 sps:$4 sm:$0xff]  }
  0xab   :  { %1823 = vmatpush2.bf16.msra.mxu0 %v3325_v12  ;;  %v3418_v12 = vld [vmem:[%s4798_s1 + $0x7c8] ss:$16 sps:$4 sm:$0xff]  }
  0xac   :  { %1864 = vmatpush2.bf16.msra.mxu1 %v3328_v13  ;;  %1824 = vmatprep.subr.bf16.mxu0 %v3333_v16  ;;  %v3423_v13 = vld [vmem:[%s4798_s1 + $0x5ac] ss:$16 sps:$4 sm:$0xff]  }
  0xad   :  { %1865 = vmatprep.subr.bf16.mxu1 %v3336_v17  ;;  %v3426_v16 = vld [vmem:[%s4798_s1 + $0x7ac] ss:$16 sps:$4 sm:$0xff]   ;;  %v3421_v17 = vld [vmem:[%s4798_s1 + $0x5a8] ss:$16 sps:$4 sm:$0xff]  }
  0xaf   :  { %1825 = vmatpush2.bf16.msra.mxu0 %v3331_v18  ;;  %v3424_v18 = vld [vmem:[%s4798_s1 + $0x7a8] ss:$16 sps:$4 sm:$0xff]  }
  0xb0   :  { %1866 = vmatpush2.bf16.msra.mxu1 %v3334_v19  ;;  %1826 = vmatprep.subr.bf16.mxu0 %v3339_v20  ;;  %v3429_v19 = vld [vmem:[%s4798_s1 + $0x58c] ss:$16 sps:$4 sm:$0xff]  }
  0xb1   :  { %1867 = vmatprep.subr.bf16.mxu1 %v3342_v21  ;;  %v3432_v20 = vld [vmem:[%s4798_s1 + $0x78c] ss:$16 sps:$4 sm:$0xff]   ;;  %v3427_v21 = vld [vmem:[%s4798_s1 + $0x588] ss:$16 sps:$4 sm:$0xff]  }
  0xb3   :  { %1827 = vmatpush2.bf16.msra.mxu0 %v3337_v24  ;;  %v3430_v24 = vld [vmem:[%s4798_s1 + $0x788] ss:$16 sps:$4 sm:$0xff]  }
  0xb4   :  { %1868 = vmatpush2.bf16.msra.mxu1 %v3340_v25  ;;  %1828 = vmatprep.subr.bf16.mxu0 %v3345_v26  ;;  %v3435_v25 = vld [vmem:[%s4798_s1 + $0x56c] ss:$16 sps:$4 sm:$0xff]  }
  0xb5   :  { %1869 = vmatprep.subr.bf16.mxu1 %v3348_v27  ;;  %v3438_v26 = vld [vmem:[%s4798_s1 + $0x76c] ss:$16 sps:$4 sm:$0xff]   ;;  %v3433_v27 = vld [vmem:[%s4798_s1 + $0x568] ss:$16 sps:$4 sm:$0xff]  }
  0xb7   :  { %1829 = vmatpush2.bf16.msra.mxu0 %v3343_v30  ;;  %v3436_v30 = vld [vmem:[%s4798_s1 + $0x768] ss:$16 sps:$4 sm:$0xff]  }
  0xb8   :  { %1870 = vmatpush2.bf16.msra.mxu1 %v3346_v31  ;;  %1830 = vmatprep.subr.bf16.mxu0 %v3351_v32  ;;  %v3441_v31 = vld [vmem:[%s4798_s1 + $0x54c] ss:$16 sps:$4 sm:$0xff]  }
  0xb9   :  { %1871 = vmatprep.subr.bf16.mxu1 %v3354_v33  ;;  %v3444_v32 = vld [vmem:[%s4798_s1 + $0x74c] ss:$16 sps:$4 sm:$0xff]   ;;  %v3439_v33 = vld [vmem:[%s4798_s1 + $0x548] ss:$16 sps:$4 sm:$0xff]  }
  0xbb   :  { %1831 = vmatpush2.bf16.msra.mxu0 %v3349_v34  ;;  %v3442_v34 = vld [vmem:[%s4798_s1 + $0x748] ss:$16 sps:$4 sm:$0xff]  }
  0xbc   :  { %1872 = vmatpush2.bf16.msra.mxu1 %v3352_v37  ;;  %1832 = vmatprep.subr.bf16.mxu0 %v3357_v38  ;;  %v3447_v37 = vld [vmem:[%s4798_s1 + $0x52c] ss:$16 sps:$4 sm:$0xff]  }
  0xbd   :  { %1873 = vmatprep.subr.bf16.mxu1 %v3360_v14  ;;  %v3450_v38 = vld [vmem:[%s4798_s1 + $0x72c] ss:$16 sps:$4 sm:$0xff]   ;;  %v3445_v14 = vld [vmem:[%s4798_s1 + $0x528] ss:$16 sps:$4 sm:$0xff]  }
  0xbf   :  { %1833 = vmatpush2.bf16.msra.mxu0 %v3355_v15  ;;  %v3448_v15 = vld [vmem:[%s4798_s1 + $0x728] ss:$16 sps:$4 sm:$0xff]  }
  0xc0   :  { %1874 = vmatpush2.bf16.msra.mxu1 %v3358_v39  ;;  %1884 = vmatprep.subr.bf16.mxu0 %v3363_v40  ;;  %v3453_v39 = vld [vmem:[%s4798_s1 + $0x50c] ss:$16 sps:$4 sm:$0xff]  }
  0xc1   :  { %1925 = vmatprep.subr.bf16.mxu1 %v3366_v41  ;;  %v3456_v40 = vld [vmem:[%s4798_s1 + $0x70c] ss:$16 sps:$4 sm:$0xff]   ;;  %v3451_v41 = vld [vmem:[%s4798_s1 + $0x508] ss:$16 sps:$4 sm:$0xff]  }
  0xc2   :  { %1835 = vmatmul.mubr.bf16.vlgmr.msra.gmra.mxu0 %v3863_v22  ;;  %v3376_v22 = vld [vmem:[%s4798_s1 + $0x6a8] ss:$16 sps:$4 sm:$0xff]  }
  0xc3   :  { %1876 = vmatmul.mubr.bf16.vlgmr.msra.gmra.mxu1 %v3865_v23  ;;  %1885 = vmatpush1.bf16.msra.mxu0 %v3361_v42  ;;  %v3381_v23 = vld [vmem:[%s4798_s1 + $0x48c] ss:$16 sps:$4 sm:$0xff]   ;;  %v3454_v42 = vld [vmem:[%s4798_s1 + $0x708] ss:$16 sps:$4 sm:$0xff]  }
  0xc4   :  { %1926 = vmatpush1.bf16.msra.mxu1 %v3364_v44  ;;  %1886 = vmatprep.subr.bf16.mxu0 %v3369_v45  ;;  %v3459_v44 = vld [vmem:[%s4800_s3 + $0x74] ss:$8 sps:$4 sm:$0xff]   ;;  %v3457_v45 = vld [vmem:[%s4800_s3 + $0x70] ss:$8 sps:$4 sm:$0xff]  }
  0xc5   :  { %1927 = vmatprep.subr.bf16.mxu1 %v3372_v46  ;;  %1916 = vmatprep.mubr.bf16.mxu0 %v3879_v28  ;;  %v3379_v28 = vld [vmem:[%s4798_s1 + $0x488] ss:$16 sps:$4 sm:$0xff]   ;;  %v3462_v46 = vld [vmem:[%s4800_s3 + $0x64] ss:$8 sps:$4 sm:$0xff]  }
  0xc6   :  { %1957 = vmatprep.mubr.bf16.mxu1 %v3881_v29  ;;  %v3382_v29 = vld [vmem:[%s4798_s1 + $0x688] ss:$16 sps:$4 sm:$0xff]  }
  0xc7   :  { %1887 = vmatpush1.bf16.msra.mxu0 %v3367_v61 }
  0xc8   :  { %1928 = vmatpush1.bf16.msra.mxu1 %v3370_v3  ;;  %1888 = vmatprep.subr.bf16.mxu0 %v3375_v47  ;;  %v3460_v47 = vld [vmem:[%s4800_s3 + $0x60] ss:$8 sps:$4 sm:$0xff]  }
  0xc9   :  { %1929 = vmatprep.subr.bf16.mxu1 %v3378_v48 }
  0xcb   :  { %1889 = vmatpush1.bf16.msra.mxu0 %v3373_v49 }
  0xcc   :  { %1930 = vmatpush1.bf16.msra.mxu1 %v3376_v22  ;;  %1890 = vmatprep.subr.bf16.mxu0 %v3381_v23  ;;  %v3465_v22 = vld [vmem:[%s4800_s3 + $0x54] ss:$8 sps:$4 sm:$0xff]  }
  0xcd   :  { %1931 = vmatprep.subr.bf16.mxu1 %v3384_v50 }
  0xcf   :  { %1891 = vmatpush1.bf16.msra.mxu0 %v3379_v28 }
  0xd0   :  { %1932 = vmatpush1.bf16.msra.mxu1 %v3382_v29  ;;  %1892 = vmatprep.subr.bf16.mxu0 %v3387_v51  ;;  %v3468_v29 = vld [vmem:[%s4800_s3 + $0x44] ss:$8 sps:$4 sm:$0xff]   ;;  %v3505_v51 = vld [vmem:[%s4800_s3 + $0x170] ss:$8 sps:$4 sm:$0xff]  }
  0xd1   :  { %1933 = vmatprep.subr.bf16.mxu1 %v3390_v52  ;;  %v3507_v52 = vld [vmem:[%s4800_s3 + $0x174] ss:$8 sps:$4 sm:$0xff]  }
  0xd3   :  { %1893 = vmatpush1.bf16.msra.mxu0 %v3385_v53  ;;  %v3510_v53 = vld [vmem:[%s4800_s3 + $0x164] ss:$8 sps:$4 sm:$0xff]  }
  0xd4   :  { %1934 = vmatpush1.bf16.msra.mxu1 %v3388_v54  ;;  %1894 = vmatprep.subr.bf16.mxu0 %v3393_v55  ;;  %v3466_v54 = vld [vmem:[%s4800_s3 + $0x40] ss:$8 sps:$4 sm:$0xff]  }
  0xd5   :  { %1935 = vmatprep.subr.bf16.mxu1 %v3396_v56  ;;  %v3508_v55 = vld [vmem:[%s4800_s3 + $0x160] ss:$8 sps:$4 sm:$0xff]   ;;  %v3471_v56 = vld [vmem:[%s4800_s3 + $0x34] ss:$8 sps:$4 sm:$0xff]  }
  0xd7   :  { %1895 = vmatpush1.bf16.msra.mxu0 %v3391_v57  ;;  %v3513_v57 = vld [vmem:[%s4800_s3 + $0x154] ss:$8 sps:$4 sm:$0xff]  }
  0xd8   :  { %1936 = vmatpush1.bf16.msra.mxu1 %v3394_v58  ;;  %1896 = vmatprep.subr.bf16.mxu0 %v3399_v59  ;;  %v3469_v58 = vld [vmem:[%s4800_s3 + $0x30] ss:$8 sps:$4 sm:$0xff]  }
  0xd9   :  { %1937 = vmatprep.subr.bf16.mxu1 %v3402_v60  ;;  %v3511_v59 = vld [vmem:[%s4800_s3 + $0x150] ss:$8 sps:$4 sm:$0xff]   ;;  %v3474_v60 = vld [vmem:[%s4800_s3 + $0x24] ss:$8 sps:$4 sm:$0xff]  }
  0xdb   :  { %1897 = vmatpush1.bf16.msra.mxu0 %v3397_v62  ;;  %v3516_v62 = vld [vmem:[%s4800_s3 + $0x144] ss:$8 sps:$4 sm:$0xff]  }
  0xdc   :  { %1938 = vmatpush1.bf16.msra.mxu1 %v3400_v63  ;;  %1898 = vmatprep.subr.bf16.mxu0 %v3405_v0  ;;  %v3472_v63 = vld [vmem:[%s4800_s3 + $0x20] ss:$8 sps:$4 sm:$0xff]  }
  0xdd   :  { %1939 = vmatprep.subr.bf16.mxu1 %v3408_v1  ;;  %v3514_v0 = vld [vmem:[%s4800_s3 + $0x140] ss:$8 sps:$4 sm:$0xff]   ;;  %v3477_v1 = vld [vmem:[%s4800_s3 + $0x14] ss:$8 sps:$4 sm:$0xff]  }
  0xdf   :  { %1899 = vmatpush1.bf16.msra.mxu0 %v3403_v2  ;;  %v3519_v2 = vld [vmem:[%s4800_s3 + $0x134] ss:$8 sps:$4 sm:$0xff]  }
  0xe0   :  { %1940 = vmatpush1.bf16.msra.mxu1 %v3406_v4  ;;  %1900 = vmatprep.subr.bf16.mxu0 %v3411_v5  ;;  %v3475_v4 = vld [vmem:[%s4800_s3 + $0x10] ss:$8 sps:$4 sm:$0xff]  }
  0xe1   :  { %1941 = vmatprep.subr.bf16.mxu1 %v3414_v6  ;;  %v3517_v5 = vld [vmem:[%s4800_s3 + $0x130] ss:$8 sps:$4 sm:$0xff]   ;;  %v3480_v6 = vld [vmem:[%s4800_s3 + $0x4] ss:$8 sps:$4 sm:$0xff]  }
  0xe3   :  { %1901 = vmatpush2.bf16.msra.mxu0 %v3409_v7  ;;  %v3522_v7 = vld [vmem:[%s4800_s3 + $0x124] ss:$8 sps:$4 sm:$0xff]  }
  0xe4   :  { %1942 = vmatpush2.bf16.msra.mxu1 %v3412_v8  ;;  %1902 = vmatprep.subr.bf16.mxu0 %v3417_v9  ;;  %v3478_v8 = vld [vmem:[%s4800_s3] ss:$8 sps:$4 sm:$0xff]  }
  0xe5   :  { %1943 = vmatprep.subr.bf16.mxu1 %v3420_v10  ;;  %v3520_v9 = vld [vmem:[%s4800_s3 + $0x120] ss:$8 sps:$4 sm:$0xff]   ;;  %v3483_v10 = vld [vmem:[%s4800_s3 + $0xf4] ss:$8 sps:$4 sm:$0xff]  }
  0xe7   :  { %1903 = vmatpush2.bf16.msra.mxu0 %v3415_v11  ;;  %v3525_v11 = vld [vmem:[%s4800_s3 + $0x114] ss:$8 sps:$4 sm:$0xff]  }
  0xe8   :  { %1944 = vmatpush2.bf16.msra.mxu1 %v3418_v12  ;;  %1904 = vmatprep.subr.bf16.mxu0 %v3423_v13  ;;  %v3481_v12 = vld [vmem:[%s4800_s3 + $0xf0] ss:$8 sps:$4 sm:$0xff]  }
  0xe9   :  { %1945 = vmatprep.subr.bf16.mxu1 %v3426_v16  ;;  %v3523_v13 = vld [vmem:[%s4800_s3 + $0x110] ss:$8 sps:$4 sm:$0xff]   ;;  %v3486_v16 = vld [vmem:[%s4800_s3 + $0xe4] ss:$8 sps:$4 sm:$0xff]  }
  0xeb   :  { %1905 = vmatpush2.bf16.msra.mxu0 %v3421_v17  ;;  %v3528_v17 = vld [vmem:[%s4800_s3 + $0x104] ss:$8 sps:$4 sm:$0xff]  }
  0xec   :  { %1946 = vmatpush2.bf16.msra.mxu1 %v3424_v18  ;;  %1906 = vmatprep.subr.bf16.mxu0 %v3429_v19  ;;  %v3484_v18 = vld [vmem:[%s4800_s3 + $0xe0] ss:$8 sps:$4 sm:$0xff]  }
  0xed   :  { %1947 = vmatprep.subr.bf16.mxu1 %v3432_v20  ;;  %v3526_v19 = vld [vmem:[%s4800_s3 + $0x100] ss:$8 sps:$4 sm:$0xff]   ;;  %v3489_v20 = vld [vmem:[%s4800_s3 + $0xd4] ss:$8 sps:$4 sm:$0xff]  }
  0xef   :  { %1907 = vmatpush2.bf16.msra.mxu0 %v3427_v21  ;;  %v3531_v21 = vld [vmem:[%s4800_s3 + $0x1f4] ss:$8 sps:$4 sm:$0xff]  }
  0xf0   :  { %1948 = vmatpush2.bf16.msra.mxu1 %v3430_v24  ;;  %1908 = vmatprep.subr.bf16.mxu0 %v3435_v25  ;;  %v3487_v24 = vld [vmem:[%s4800_s3 + $0xd0] ss:$8 sps:$4 sm:$0xff]  }
  0xf1   :  { %1949 = vmatprep.subr.bf16.mxu1 %v3438_v26  ;;  %v3529_v25 = vld [vmem:[%s4800_s3 + $0x1f0] ss:$8 sps:$4 sm:$0xff]   ;;  %v3492_v26 = vld [vmem:[%s4800_s3 + $0xc4] ss:$8 sps:$4 sm:$0xff]  }
  0xf3   :  { %1909 = vmatpush2.bf16.msra.mxu0 %v3433_v27  ;;  %v3534_v27 = vld [vmem:[%s4800_s3 + $0x1e4] ss:$8 sps:$4 sm:$0xff]  }
  0xf4   :  { %1950 = vmatpush2.bf16.msra.mxu1 %v3436_v30  ;;  %1910 = vmatprep.subr.bf16.mxu0 %v3441_v31  ;;  %v3490_v30 = vld [vmem:[%s4800_s3 + $0xc0] ss:$8 sps:$4 sm:$0xff]  }
  0xf5   :  { %1951 = vmatprep.subr.bf16.mxu1 %v3444_v32  ;;  %v3532_v31 = vld [vmem:[%s4800_s3 + $0x1e0] ss:$8 sps:$4 sm:$0xff]   ;;  %v3495_v32 = vld [vmem:[%s4800_s3 + $0xb4] ss:$8 sps:$4 sm:$0xff]  }
  0xf7   :  { %1911 = vmatpush2.bf16.msra.mxu0 %v3439_v33  ;;  %v3537_v33 = vld [vmem:[%s4800_s3 + $0x1d4] ss:$8 sps:$4 sm:$0xff]  }
  0xf8   :  { %1952 = vmatpush2.bf16.msra.mxu1 %v3442_v34  ;;  %1912 = vmatprep.subr.bf16.mxu0 %v3447_v37  ;;  %v3493_v34 = vld [vmem:[%s4800_s3 + $0xb0] ss:$8 sps:$4 sm:$0xff]  }
  0xf9   :  { %1953 = vmatprep.subr.bf16.mxu1 %v3450_v38  ;;  %v3535_v37 = vld [vmem:[%s4800_s3 + $0x1d0] ss:$8 sps:$4 sm:$0xff]   ;;  %v3498_v38 = vld [vmem:[%s4800_s3 + $0xa4] ss:$8 sps:$4 sm:$0xff]  }
  0xfb   :  { %1913 = vmatpush2.bf16.msra.mxu0 %v3445_v14  ;;  %v3540_v14 = vld [vmem:[%s4800_s3 + $0x1c4] ss:$8 sps:$4 sm:$0xff]  }
  0xfc   :  { %1954 = vmatpush2.bf16.msra.mxu1 %v3448_v15  ;;  %1914 = vmatprep.subr.bf16.mxu0 %v3453_v39  ;;  %v3496_v15 = vld [vmem:[%s4800_s3 + $0xa0] ss:$8 sps:$4 sm:$0xff]  }
  0xfd   :  { %1955 = vmatprep.subr.bf16.mxu1 %v3456_v40  ;;  %v3538_v39 = vld [vmem:[%s4800_s3 + $0x1c0] ss:$8 sps:$4 sm:$0xff]   ;;  %v3501_v40 = vld [vmem:[%s4800_s3 + $0x94] ss:$8 sps:$4 sm:$0xff]  }
  0xff   :  { %1915 = vmatpush2.bf16.msra.mxu0 %v3451_v41  ;;  %v3543_v41 = vld [vmem:[%s4800_s3 + $0x1b4] ss:$8 sps:$4 sm:$0xff]  }
 0x100   :  { %1956 = vmatpush2.bf16.msra.mxu1 %v3454_v42  ;;  %2370 = vmatprep.subr.bf16.mxu0 %v3459_v44  ;;  %v4634_v42 = vsub.s32 0, %v3759_v43  ;;  %v4639_v44 = vld [vmem:[%s4801_s2] sm:$0xf] }
 0x101   :  { %2411 = vmatprep.subr.bf16.mxu1 %v3507_v52  ;;  %v3544_v52 = vld [vmem:[%s4800_s3 + $0x1a0] ss:$8 sps:$4 sm:$0xff]  }
 0x102   :  { %v4470_v61 = vpop.f32.mrf.mxu0  ;;  %1917 = vmatmul.mubr.bf16.vlgmr.msra.gmra.mxu0 %v4069_v35  ;;  %v3463_v35 = vld [vmem:[%s4800_s3 + $0x50] ss:$8 sps:$4 sm:$0xff]  }
 0x103   :  { %v4472_v3 = vpop.f32.mrf.mxu1  ;;  %1958 = vmatmul.mubr.bf16.vlgmr.msra.gmra.mxu1 %v4073_v36  ;;  %2371 = vmatpush1.bf16.msra.mxu0 %v3457_v45  ;;  %v4642_v45 = vsub.s32 1, %v3759_v43 }
 0x104   :  { %v4479_v48 = vpop.f32.mrf.mxu0  ;;  %2372 = vmatprep.subr.bf16.mxu0 %v3462_v46  ;;  %2412 = vmatpush1.bf16.msra.mxu1 %v3505_v51  ;;  %v3499_v46 = vld [vmem:[%s4800_s3 + $0x90] ss:$8 sps:$4 sm:$0xff]  }
 0x105   :  { %v4481_v49 = vpop.f32.mrf.mxu1  ;;  %2413 = vmatprep.subr.bf16.mxu1 %v3510_v53 }
 0x106   :  { %v1676_v23 = vpop.f32.mrf.mxu0 }
 0x107   :  { %v1717_v50 = vpop.f32.mrf.mxu1  ;;  %2373 = vmatpush1.bf16.msra.mxu0 %v3460_v47  ;;  %v3541_v47 = vld [vmem:[%s4800_s3 + $0x1b0] ss:$8 sps:$4 sm:$0xff]   ;;  %v341_v23 = vrot.slane %v4639_v44, %v4634_v42 }
 0x108   :  { %v1677_v36 = vpop.f32.mrf.mxu0  ;;  %2374 = vmatprep.subr.bf16.mxu0 %v3465_v22  ;;  %2414 = vmatpush1.bf16.msra.mxu1 %v3508_v55  ;;  %v3504_v22 = vld [vmem:[%s4800_s3 + $0x84] ss:$8 sps:$4 sm:$0xff]   ;;  %v345_v50 = vrot.slane %v4639_v44, %v4642_v45 }
 0x109   :  { %v1718_v28 = vpop.f32.mrf.mxu1  ;;  %2415 = vmatprep.subr.bf16.mxu1 %v3513_v57  ;;  %v1673_v36 = vadd.f32 %v4470_v61, %v341_v23  ;;  %v3549_v57 = vld [vmem:[%s4800_s3 + $0x194] ss:$8 sps:$4 sm:$0xff]  }
 0x10a   :  { %v1675_v28 = vadd.f32 %v4479_v48, %v345_v50  ;;  %v3585_v23 = vld [vmem:[%s4802_s5 + $0xd4] ss:$8 sps:$4 sm:$0xff]  }
 0x10b   :  { %2375 = vmatpush1.bf16.msra.mxu0 %v3463_v35  ;;  %v3502_v35 = vld [vmem:[%s4800_s3 + $0x80] ss:$8 sps:$4 sm:$0xff]   ;;  %v1714_v51 = vadd.f32 %v4472_v3, %v1673_v36  ;;  %v3547_v3 = vld [vmem:[%s4800_s3 + $0x190] ss:$8 sps:$4 sm:$0xff]   ;;  %v3588_v36 = vld [vmem:[%s4802_s5 + $0xc4] ss:$8 sps:$4 sm:$0xff]  }
 0x10c   :  { %2376 = vmatprep.subr.bf16.mxu0 %v3468_v29  ;;  %2416 = vmatpush1.bf16.msra.mxu1 %v3511_v59  ;;  %v3546_v29 = vld [vmem:[%s4800_s3 + $0x1a4] ss:$8 sps:$4 sm:$0xff]   ;;  %v1716_v55 = vadd.f32 %v4481_v49, %v1675_v28 }
 0x10d   :  { %2417 = vmatprep.subr.bf16.mxu1 %v3516_v62 }
 0x10f   :  { %2377 = vmatpush1.bf16.msra.mxu0 %v3466_v54 }
 0x110   :  { %2378 = vmatprep.subr.bf16.mxu0 %v3471_v56  ;;  %2418 = vmatpush1.bf16.msra.mxu1 %v3514_v0 }
 0x111   :  { %2419 = vmatprep.subr.bf16.mxu1 %v3519_v2  ;;  %v3552_v2 = vld [vmem:[%s4800_s3 + $0x184] ss:$8 sps:$4 sm:$0xff]  }
 0x113   :  { %2379 = vmatpush1.bf16.msra.mxu0 %v3469_v58 }
 0x114   :  { %2380 = vmatprep.subr.bf16.mxu0 %v3474_v60  ;;  %2420 = vmatpush1.bf16.msra.mxu1 %v3517_v5  ;;  %v3550_v5 = vld [vmem:[%s4800_s3 + $0x180] ss:$8 sps:$4 sm:$0xff]  }
 0x115   :  { %2421 = vmatprep.subr.bf16.mxu1 %v3522_v7 }
 0x117   :  { %2381 = vmatpush1.bf16.msra.mxu0 %v3472_v63 }
 0x118   :  { %2382 = vmatprep.subr.bf16.mxu0 %v3477_v1  ;;  %2422 = vmatpush1.bf16.msra.mxu1 %v3520_v9 }
 0x119   :  { %2423 = vmatprep.subr.bf16.mxu1 %v3525_v11 }
 0x11b   :  { %2383 = vmatpush1.bf16.msra.mxu0 %v3475_v4 }
 0x11c   :  { %2384 = vmatprep.subr.bf16.mxu0 %v3480_v6  ;;  %2424 = vmatpush1.bf16.msra.mxu1 %v3523_v13 }
 0x11d   :  { %2425 = vmatprep.subr.bf16.mxu1 %v3528_v17 }
 0x11f   :  { %2385 = vmatpush1.bf16.msra.mxu0 %v3478_v8 }
 0x120   :  { %2386 = vmatprep.subr.bf16.mxu0 %v3483_v10  ;;  %2426 = vmatpush1.bf16.msra.mxu1 %v3526_v19  ;;  %v3555_v19 = vld [vmem:[%s4802_s5 + $0x74] ss:$8 sps:$4 sm:$0xff]  }
 0x121   :  { %2427 = vmatprep.subr.bf16.mxu1 %v3531_v21  ;;  %v3556_v21 = vld [vmem:[%s4802_s5 + $0x60] ss:$8 sps:$4 sm:$0xff]  }
 0x123   :  { %2387 = vmatpush2.bf16.msra.mxu0 %v3481_v12 }
 0x124   :  { %2388 = vmatprep.subr.bf16.mxu0 %v3486_v16  ;;  %2428 = vmatpush2.bf16.msra.mxu1 %v3529_v25  ;;  %v3559_v25 = vld [vmem:[%s4802_s5 + $0x50] ss:$8 sps:$4 sm:$0xff]  }
 0x125   :  { %2429 = vmatprep.subr.bf16.mxu1 %v3534_v27  ;;  %v3562_v27 = vld [vmem:[%s4802_s5 + $0x40] ss:$8 sps:$4 sm:$0xff]  }
 0x127   :  { %2389 = vmatpush2.bf16.msra.mxu0 %v3484_v18  ;;  %v3553_v18 = vld [vmem:[%s4802_s5 + $0x70] ss:$8 sps:$4 sm:$0xff]  }
 0x128   :  { %2390 = vmatprep.subr.bf16.mxu0 %v3489_v20  ;;  %2430 = vmatpush2.bf16.msra.mxu1 %v3532_v31  ;;  %v3558_v20 = vld [vmem:[%s4802_s5 + $0x64] ss:$8 sps:$4 sm:$0xff]   ;;  %v3565_v31 = vld [vmem:[%s4802_s5 + $0x30] ss:$8 sps:$4 sm:$0xff]  }
 0x129   :  { %2431 = vmatprep.subr.bf16.mxu1 %v3537_v33  ;;  %v3568_v33 = vld [vmem:[%s4802_s5 + $0x20] ss:$8 sps:$4 sm:$0xff]  }
 0x12b   :  { %2391 = vmatpush2.bf16.msra.mxu0 %v3487_v24  ;;  %v3561_v24 = vld [vmem:[%s4802_s5 + $0x54] ss:$8 sps:$4 sm:$0xff]  }
 0x12c   :  { %2392 = vmatprep.subr.bf16.mxu0 %v3492_v26  ;;  %2432 = vmatpush2.bf16.msra.mxu1 %v3535_v37  ;;  %v3564_v26 = vld [vmem:[%s4802_s5 + $0x44] ss:$8 sps:$4 sm:$0xff]   ;;  %v3571_v37 = vld [vmem:[%s4802_s5 + $0x10] ss:$8 sps:$4 sm:$0xff]  }
 0x12d   :  { %2433 = vmatprep.subr.bf16.mxu1 %v3540_v14  ;;  %v3574_v14 = vld [vmem:[%s4802_s5] ss:$8 sps:$4 sm:$0xff]  }
 0x12f   :  { %2393 = vmatpush2.bf16.msra.mxu0 %v3490_v30  ;;  %v3567_v30 = vld [vmem:[%s4802_s5 + $0x34] ss:$8 sps:$4 sm:$0xff]  }
 0x130   :  { %2394 = vmatprep.subr.bf16.mxu0 %v3495_v32  ;;  %2434 = vmatpush2.bf16.msra.mxu1 %v3538_v39  ;;  %v3570_v32 = vld [vmem:[%s4802_s5 + $0x24] ss:$8 sps:$4 sm:$0xff]   ;;  %v348_v39 = vsub.s32 2, %v3759_v43 }
 0x131   :  { %2435 = vmatprep.subr.bf16.mxu1 %v3543_v41  ;;  %v3582_v41 = vld [vmem:[%s4802_s5 + $0xe4] ss:$8 sps:$4 sm:$0xff]  }
 0x133   :  { %2395 = vmatpush2.bf16.msra.mxu0 %v3493_v34  ;;  %v3573_v34 = vld [vmem:[%s4802_s5 + $0x14] ss:$8 sps:$4 sm:$0xff]  }
 0x134   :  { %2396 = vmatprep.subr.bf16.mxu0 %v3498_v38  ;;  %2436 = vmatpush2.bf16.msra.mxu1 %v3541_v47  ;;  %v3576_v38 = vld [vmem:[%s4802_s5 + $0x4] ss:$8 sps:$4 sm:$0xff]   ;;  %v349_v47 = vrot.slane %v4639_v44, %v348_v39 }
 0x135   :  { %2437 = vmatprep.subr.bf16.mxu1 %v3546_v29 }
 0x137   :  { %2397 = vmatpush2.bf16.msra.mxu0 %v3496_v15  ;;  %v3579_v15 = vld [vmem:[%s4802_s5 + $0xf4] ss:$8 sps:$4 sm:$0xff]  }
 0x138   :  { %2398 = vmatprep.subr.bf16.mxu0 %v3501_v40  ;;  %2438 = vmatpush2.bf16.msra.mxu1 %v3544_v52  ;;  %v3577_v40 = vld [vmem:[%s4802_s5 + $0xf0] ss:$8 sps:$4 sm:$0xff]  }
 0x139   :  { %2439 = vmatprep.subr.bf16.mxu1 %v3549_v57 }
 0x13b   :  { %2399 = vmatpush2.bf16.msra.mxu0 %v3499_v46  ;;  %v352_v46 = vsub.s32 3, %v3759_v43  ;;  %v3583_v43 = vld [vmem:[%s4802_s5 + $0xd0] ss:$8 sps:$4 sm:$0xff]  }
 0x13c   :  { %2400 = vmatprep.subr.bf16.mxu0 %v3504_v22  ;;  %2440 = vmatpush2.bf16.msra.mxu1 %v3547_v3  ;;  %v3580_v22 = vld [vmem:[%s4802_s5 + $0xe0] ss:$8 sps:$4 sm:$0xff]  }
 0x13d   :  { %2441 = vmatprep.subr.bf16.mxu1 %v3552_v2  ;;  %v353_v50 = vrot.slane %v4639_v44, %v352_v46  ;;  %v3592_v2 = vld [vmem:[%s4802_s5 + $0xa0] ss:$8 sps:$4 sm:$0xff]  }
 0x13f   :  { %2401 = vmatpush2.bf16.msra.mxu0 %v3502_v35 }
 0x140   :  { %2442 = vmatpush2.bf16.msra.mxu1 %v3550_v5  ;;  %2660 = vmatprep.subr.bf16.mxu0 %v3555_v19 }
 0x142   :  { %v1754_v53 = vpop.f32.mrf.mxu0 }
 0x143   :  { %v1795_v54 = vpop.f32.mrf.mxu1  ;;  %v1755_v56 = vadd.f32 %v1754_v53, %v1714_v51  ;;  %v3586_v51 = vld [vmem:[%s4802_s5 + $0xc0] ss:$8 sps:$4 sm:$0xff]   ;;  %v3591_v53 = vld [vmem:[%s4802_s5 + $0xb4] ss:$8 sps:$4 sm:$0xff]  }
 0x144   :  { %v1756_v61 = vpop.f32.mrf.mxu0 }
 0x145   :  { %v1797_v48 = vpop.f32.mrf.mxu1  ;;  %v1796_v58 = vadd.f32 %v1795_v54, %v1755_v56  ;;  %v1757_v59 = vadd.f32 %v1756_v61, %v1716_v55 }
 0x146   :  { %v1758_v60 = vpop.f32.mrf.mxu0 }
 0x147   :  { %v1799_v62 = vpop.f32.mrf.mxu1  ;;  %v1798_v63 = vadd.f32 %v1797_v48, %v1757_v59  ;;  %v1966_v49 = vmax.f32 %v1796_v58, 0.0  ;;  %v3589_v58 = vld [vmem:[%s4802_s5 + $0xb0] ss:$8 sps:$4 sm:$0xff]   ;;  %v3594_v60 = vld [vmem:[%s4802_s5 + $0xa4] ss:$8 sps:$4 sm:$0xff]  }
 0x148   :  { %v1759_v0 = vpop.f32.mrf.mxu0 }
 0x149   :  { %v1800_v1 = vpop.f32.mrf.mxu1  ;;  %v1967_v4 = vmax.f32 %v1798_v63, 0.0  ;;  %v1970_v7 = vpack.c.bf16 %v1966_v49, %v1966_v49 }
 0x14b   :  { %v1971_v6 = vpack.c.bf16 %v1967_v4, %v1967_v4 }
 0x14d   :  { %2402 = vmatprep.mubr.bf16.mxu0 %v1971_v6 }
 0x14e   :  { %2403 = vmatmul.mubr.bf16.vlgmr.msra.gmra.mxu0 %v1970_v7  ;;  %v3597_v7 = vld [vmem:[%s4802_s5 + $0x94] ss:$8 sps:$4 sm:$0xff]  }
 0x14f   :  { %2661 = vmatpush1.bf16.msra.mxu0 %v3553_v18 }
 0x150   :  { %2662 = vmatprep.subr.bf16.mxu0 %v3558_v20 }
 0x153   :  { %2663 = vmatpush1.bf16.msra.mxu0 %v3556_v21 }
 0x154   :  { %2664 = vmatprep.subr.bf16.mxu0 %v3561_v24 }
 0x157   :  { %2665 = vmatpush1.bf16.msra.mxu0 %v3559_v25 }
 0x158   :  { %2666 = vmatprep.subr.bf16.mxu0 %v3564_v26 }
 0x15b   :  { %2667 = vmatpush1.bf16.msra.mxu0 %v3562_v27 }
 0x15c   :  { %2668 = vmatprep.subr.bf16.mxu0 %v3567_v30 }
 0x15f   :  { %2669 = vmatpush1.bf16.msra.mxu0 %v3565_v31 }
 0x160   :  { %2670 = vmatprep.subr.bf16.mxu0 %v3570_v32 }
 0x163   :  { %2671 = vmatpush1.bf16.msra.mxu0 %v3568_v33 }
 0x164   :  { %2672 = vmatprep.subr.bf16.mxu0 %v3573_v34 }
 0x167   :  { %2673 = vmatpush1.bf16.msra.mxu0 %v3571_v37  ;;  %v2488_v37 = vld [vmem:[%s4804_s6] sm:$0x3] }
 0x168   :  { %2674 = vmatprep.subr.bf16.mxu0 %v3576_v38  ;;  %v2493_v38 = vrot.slane %v2488_v37, %v4634_v42 }
 0x16b   :  { %2675 = vmatpush1.bf16.msra.mxu0 %v3574_v14  ;;  %v2497_v14 = vrot.slane %v2488_v37, %v4642_v45 }
 0x16c   :  { %2676 = vmatprep.subr.bf16.mxu0 %v3579_v15 }
 0x16f   :  { %2677 = vmatpush2.bf16.msra.mxu0 %v3577_v40 }
 0x170   :  { %2678 = vmatprep.subr.bf16.mxu0 %v3582_v41 }
 0x173   :  { %2679 = vmatpush2.bf16.msra.mxu0 %v3580_v22 }
 0x174   :  { %2680 = vmatprep.subr.bf16.mxu0 %v3585_v23 }
 0x177   :  { %2681 = vmatpush2.bf16.msra.mxu0 %v3583_v43 }
 0x178   :  { %2682 = vmatprep.subr.bf16.mxu0 %v3588_v36 }
 0x17b   :  { %2683 = vmatpush2.bf16.msra.mxu0 %v3586_v51 }
 0x17c   :  { %2684 = vmatprep.subr.bf16.mxu0 %v3591_v53 }
 0x17f   :  { %2685 = vmatpush2.bf16.msra.mxu0 %v3589_v58 }
 0x180   :  { %2686 = vmatprep.subr.bf16.mxu0 %v3594_v60 }
 0x182   :  { %v1836_v8 = vpop.f32.mrf.mxu0 }
 0x183   :  { %v1877_v9 = vpop.f32.mrf.mxu1  ;;  %v1837_v35 = vadd.f32 %v1836_v8, %v349_v47  ;;  %2687 = vmatpush2.bf16.msra.mxu0 %v3592_v2  ;;  %v3595_v8 = vld [vmem:[%s4802_s5 + $0x90] ss:$8 sps:$4 sm:$0xff]  }
 0x184   :  { %v1838_v10 = vpop.f32.mrf.mxu0  ;;  %2688 = vmatprep.subr.bf16.mxu0 %v3597_v7 }
 0x185   :  { %v4682_v11 = vpop.f32.mrf.mxu1  ;;  %v1839_v28 = vadd.f32 %v1838_v10, %v353_v50  ;;  %v1878_v29 = vadd.f32 %v1877_v9, %v1837_v35 }
 0x186   :  { %v1840_v12 = vpop.f32.mrf.mxu0 }
 0x187   :  { %v1881_v13 = vpop.f32.mrf.mxu1  ;;  %v1880_v54 = vadd.f32 %v4682_v11, %v1839_v28  ;;  %2689 = vmatpush2.bf16.msra.mxu0 %v3595_v8  ;;  %v3600_v11 = vld [vmem:[%s4802_s5 + $0x84] ss:$8 sps:$4 sm:$0xff]   ;;  %v3598_v12 = vld [vmem:[%s4802_s5 + $0x80] ss:$8 sps:$4 sm:$0xff]  }
 0x188   :  { %v1841_v16 = vpop.f32.mrf.mxu0  ;;  %2690 = vmatprep.subr.bf16.mxu0 %v3600_v11 }
 0x189   :  { %v1882_v17 = vpop.f32.mrf.mxu1  ;;  %v2038_v16 = vld [vmem:[%s4803_s4] sm:$0x3] }
 0x18a   :  { %v2043_v17 = vrot.slane %v2038_v16, %v4634_v42  ;;  %v2047_v18 = vrot.slane %v2038_v16, %v4642_v45 }
 0x18b   :  { %2691 = vmatpush2.bf16.msra.mxu0 %v3598_v12 }
 0x1c2   :  { %v1918_v52 = vpop.f32.mrf.mxu0 }
 0x1c3   :  { %v1959_v44 = vpop.f32.mrf.mxu1  ;;  %v1919_v55 = vadd.f32 %v1918_v52, %v1878_v29 }
 0x1c4   :  { %v1920_v56 = vpop.f32.mrf.mxu0 }
 0x1c5   :  { %v1961_v61 = vpop.f32.mrf.mxu1  ;;  %v1960_v48 = vadd.f32 %v1959_v44, %v1919_v55  ;;  %v1921_v57 = vadd.f32 %v1920_v56, %v1880_v54 }
 0x1c6   :  { %v1922_v59 = vpop.f32.mrf.mxu0 }
 0x1c7   :  { %v1963_v3 = vpop.f32.mrf.mxu1  ;;  %v1962_v62 = vadd.f32 %v1961_v61, %v1921_v57  ;;  %v1968_v63 = vmax.f32 %v1960_v48, 0.0 }
 0x1c8   :  { %v1923_v49 = vpop.f32.mrf.mxu0 }
 0x1c9   :  { %v1964_v0 = vpop.f32.mrf.mxu1  ;;  %v1969_v1 = vmax.f32 %v1962_v62, 0.0  ;;  %v1972_v5 = vpack.c.bf16 %v1968_v63, %v1968_v63 }
 0x1cb   :  { %v1973_v4 = vpack.c.bf16 %v1969_v1, %v1969_v1 }
 0x1cd   :  { %2443 = vmatprep.mubr.bf16.mxu1 %v1973_v4 }
 0x1ce   :  { %2444 = vmatmul.mubr.bf16.vlgmr.msra.gmra.mxu1 %v1972_v5 }
 0x20e   :  { %v2404_v6 = vpop.f32.mrf.mxu0 }
 0x20f   :  { %v2405_v19 = vadd.f32 %v2404_v6, %v2043_v17 }
 0x210   :  { %v2406_v9 = vpop.f32.mrf.mxu0 }
 0x211   :  { %v2407_v21 = vadd.f32 %v2406_v9, %v2047_v18 }
 0x212   :  { %v2408_v10 = vpop.f32.mrf.mxu0 }
 0x214   :  { %v2409_v13 = vpop.f32.mrf.mxu0 }
 0x28e   :  { %v2445_v20 = vpop.f32.mrf.mxu1 }
 0x28f   :  { %v2446_v24 = vadd.f32 %v2445_v20, %v2405_v19 }
 0x290   :  { %v2447_v25 = vpop.f32.mrf.mxu1 }
 0x291   :  { %v2448_v26 = vadd.f32 %v2447_v25, %v2407_v21  ;;  %v2452_v27 = vmax.f32 %v2446_v24, 0.0 }
 0x292   :  { %v2449_v30 = vpop.f32.mrf.mxu1 }
 0x293   :  { %v2453_v31 = vmax.f32 %v2448_v26, 0.0  ;;  %v2454_v34 = vpack.c.bf16 %v2452_v27, %v2452_v27 }
 0x294   :  { %v2450_v32 = vpop.f32.mrf.mxu1 }
 0x295   :  { %v2455_v33 = vpack.c.bf16 %v2453_v31, %v2453_v31 }
 0x297   :  { %2692 = vmatprep.mubr.bf16.mxu0 %v2455_v33 }
 0x298   :  { %2693 = vmatmul.mubr.bf16.vlgmr.msra.gmra.mxu0 %v2454_v34 }
 0x358   :  { %v2694_v15 = vpop.f32.mrf.mxu0 }
 0x359   :  { %v2695_v40 = vadd.f32 %v2694_v15, %v2493_v38 }
 0x35a   :  { %v2696_v39 = vpop.f32.mrf.mxu0 }
 0x35b   :  { %v2697_v41 = vadd.f32 %v2696_v39, %v2497_v14 }
 0x35c   :  { %v2698_v46 = vpop.f32.mrf.mxu0 }
 0x35d   :  { %v2703_v47 = vcombine.low %v2695_v40, %v2697_v41 }
 0x35e   :  { %v2699_v22 = vpop.f32.mrf.mxu0 }
 0x35f   :  { %3069 = vst.sshfl [vmem:[%s4805_s7] sm:$0x33 pattern:$0x76325410] %v2703_v47 }

</bundles_post_ra>
